<compile_context>
chip_gen: v7x
topology: tpu7x:2x2x1
jax: 0.10.0
libtpu: 0.0.40
codegen_flags: <defaults>
</compile_context>

<pallas_src>
import math

import jax
import jax.numpy as jnp
from jax.experimental import pallas as pl
from jax.experimental.pallas import tpu as pltpu


NEG_INF = -1e30  # finite sentinel: safe for fully-masked rows, bf16-safe


def _round_up(x, m):
    return (x + m - 1) // m * m


def _make_fused_kernel(n_head, hd, C, tq, tkv):
    scale = 1.0 / math.sqrt(hd)

    def kernel(xq_ref, xkv_ref, wq_ref, wk_ref, wv_ref,
               bq_ref, bk_ref, bv_ref, wp_ref, bp_ref,
               o_ref, q_scr, m_scr, l_scr, acc_scr):
        qi = pl.program_id(1)
        ki = pl.program_id(2)

        # ---- init (once per q-tile): project + scale q, reset softmax state
        @pl.when(ki == 0)
        def _init():
            q = jnp.dot(xq_ref[...], wq_ref[...],
                        preferred_element_type=jnp.float32) + bq_ref[...]
            q = q * scale                                   # fold 1/sqrt(hd) into q
            q = jnp.transpose(q.reshape(tq, n_head, hd), (1, 0, 2))
            q_scr[...] = q.astype(q_scr.dtype)              # (nh, tq, hd) bf16
            m_scr[...] = jnp.full_like(m_scr, NEG_INF)
            l_scr[...] = jnp.zeros_like(l_scr)
            acc_scr[...] = jnp.zeros_like(acc_scr)

        # ---- online-softmax update; skip tiles fully above the causal diagonal
        @pl.when(ki * tkv <= qi * tq + (tq - 1))
        def _compute():
            xkv = xkv_ref[...]                              # (tkv, C) bf16
            k = (jnp.dot(xkv, wk_ref[...], preferred_element_type=jnp.float32)
                 + bk_ref[...]).astype(jnp.bfloat16)
            v = (jnp.dot(xkv, wv_ref[...], preferred_element_type=jnp.float32)
                 + bv_ref[...]).astype(jnp.bfloat16)
            k = jnp.transpose(k.reshape(tkv, n_head, hd), (1, 0, 2))  # (nh, tkv, hd)
            v = jnp.transpose(v.reshape(tkv, n_head, hd), (1, 0, 2))  # (nh, tkv, hd)

            # s[h, q, k] for all heads in one batched MXU call (bf16 in, f32 acc)
            s = jax.lax.dot_general(
                q_scr[...], k,
                dimension_numbers=(((2,), (2,)), ((0,), (0,))),
                preferred_element_type=jnp.float32)         # (nh, tq, tkv)

            # per-tile causal mask from small offset iotas (no (T,T) buffers)
            row = qi * tq + jax.lax.broadcasted_iota(jnp.int32, (tq, tkv), 0)
            col = ki * tkv + jax.lax.broadcasted_iota(jnp.int32, (tq, tkv), 1)
            s = jnp.where((col <= row)[None, :, :], s, NEG_INF)

            m_prev = m_scr[...]
            m_new = jnp.maximum(m_prev, jnp.max(s, axis=-1, keepdims=True))
            alpha = jnp.exp(m_prev - m_new)
            p = jnp.exp(s - m_new)                          # (nh, tq, tkv) f32

            l_scr[...] = alpha * l_scr[...] + jnp.sum(p, axis=-1, keepdims=True)
            pv = jax.lax.dot_general(
                p.astype(jnp.bfloat16), v,
                dimension_numbers=(((2,), (1,)), ((0,), (0,))),
                preferred_element_type=jnp.float32)         # (nh, tq, hd)
            acc_scr[...] = alpha * acc_scr[...] + pv
            m_scr[...] = m_new

        # ---- finalize (once per q-tile): normalize, merge heads, apply c_proj
        @pl.when(ki == pl.num_programs(2) - 1)
        def _finalize():
            y = acc_scr[...] / l_scr[...]                   # exact divide (once/tile)
            y = jnp.transpose(y, (1, 0, 2)).reshape(tq, C)  # lane-dense (tq, C)
            out = jnp.dot(y.astype(jnp.bfloat16), wp_ref[...],
                          preferred_element_type=jnp.float32) + bp_ref[...]
            o_ref[...] = out.astype(o_ref.dtype)            # single lane-dense store

    return kernel


def causal_self_attention(x, params, n_head, *, tile=256):
    """x: (B, T, C) float32 -> (B, T, C). Fused c_attn + causal attn + c_proj."""
    B, T, C = x.shape
    assert C % n_head == 0
    hd = C // n_head
    out_dtype = x.dtype

    # Tile sizes: full-extent block when T is small (always legal), otherwise
    # 256-aligned q/kv tiles sized against the v7x 32 MiB scoped-VMEM default.
    if T <= tile:
        tq = tkv = T
        Tp = T
    else:
        tq = tkv = tile
        Tp = _round_up(T, tile)

    # Split packed c_attn weights into per-projection slabs (avoids non-128
    # lane-offset slices inside the kernel) and cast MXU inputs to bf16.
    w_attn, b_attn = params["w_attn"], params["b_attn"]
    wq = w_attn[:, :C].astype(jnp.bfloat16)
    wk = w_attn[:, C:2 * C].astype(jnp.bfloat16)
    wv = w_attn[:, 2 * C:].astype(jnp.bfloat16)
    bq = b_attn[:C].reshape(1, C).astype(jnp.float32)
    bk = b_attn[C:2 * C].reshape(1, C).astype(jnp.float32)
    bv = b_attn[2 * C:].reshape(1, C).astype(jnp.float32)
    wp = params["w_proj"].astype(jnp.bfloat16)
    bp = params["b_proj"].reshape(1, C).astype(jnp.float32)

    x_bf = x.astype(jnp.bfloat16)
    if Tp != T:
        x_bf = jnp.pad(x_bf, ((0, 0), (0, Tp - T), (0, 0)))

    kernel = _make_fused_kernel(n_head, hd, C, tq, tkv)

    const = lambda b, qi, ki: (0, 0)  # VMEM-resident weight blocks
    cost = pl.CostEstimate(
        flops=B * (2 * Tp * C * 3 * C + 4 * Tp * Tp * C + 2 * Tp * C * C),
        transcendentals=B * n_head * Tp * Tp,
        bytes_accessed=2 * B * Tp * C * 2 + 8 * C * C + B * Tp * C * 4,
    )

    # TODO(synk): for very large C / T, precompute K/V with a separate tiled
    # projection kernel (the per-kv-tile K/V projection here is recomputed for
    # every q-tile), or cache projected K/V tiles in VMEM scratch.
    out = pl.pallas_call(
        kernel,
        out_shape=jax.ShapeDtypeStruct((B, Tp, C), out_dtype),
        grid_spec=pltpu.PrefetchScalarGridSpec(
            num_scalar_prefetch=0,
            grid=(B, Tp // tq, Tp // tkv),                  # kv reduction axis last
            in_specs=[
                pl.BlockSpec((None, tq, C), lambda b, qi, ki: (b, qi, 0)),   # x (q rows)
                pl.BlockSpec((None, tkv, C), lambda b, qi, ki: (b, ki, 0)),  # x (kv rows)
                pl.BlockSpec((C, C), const),   # wq
                pl.BlockSpec((C, C), const),   # wk
                pl.BlockSpec((C, C), const),   # wv
                pl.BlockSpec((1, C), const),   # bq
                pl.BlockSpec((1, C), const),   # bk
                pl.BlockSpec((1, C), const),   # bv
                pl.BlockSpec((C, C), const),   # w_proj
                pl.BlockSpec((1, C), const),   # b_proj
            ],
            out_specs=pl.BlockSpec((None, tq, C), lambda b, qi, ki: (b, qi, 0)),
            scratch_shapes=[
                pltpu.VMEM((n_head, tq, hd), jnp.bfloat16),  # q (head-major)
                pltpu.VMEM((n_head, tq, 1), jnp.float32),    # m (running max)
                pltpu.VMEM((n_head, tq, 1), jnp.float32),    # l (running denom)
                pltpu.VMEM((n_head, tq, hd), jnp.float32),   # acc
            ],
        ),
        compiler_params=pltpu.CompilerParams(
            dimension_semantics=("parallel", "parallel", "arbitrary"),
        ),
        cost_estimate=cost,
    )(x_bf, x_bf, wq, wk, wv, bq, bk, bv, wp, bp)

    if Tp != T:
        out = out[:, :T, :]
    # TODO(synk): attn_dropout / resid_dropout omitted (inference, dropout_p=0).
    return out


# ---------------------------------------------------------------------------
# Pure-JAX reference for correctness check
# ---------------------------------------------------------------------------
def reference(x, params, n_head):
    B, T, C = x.shape
    hd = C // n_head
    qkv = x @ params["w_attn"] + params["b_attn"]
    q, k, v = jnp.split(qkv, 3, axis=2)
    q = q.reshape(B, T, n_head, hd).transpose(0, 2, 1, 3)
    k = k.reshape(B, T, n_head, hd).transpose(0, 2, 1, 3)
    v = v.reshape(B, T, n_head, hd).transpose(0, 2, 1, 3)
    s = (q @ jnp.swapaxes(k, -1, -2)) / math.sqrt(hd)
    mask = jnp.tril(jnp.ones((T, T), dtype=bool))
    s = jnp.where(mask[None, None], s, -jnp.inf)
    p = jax.nn.softmax(s, axis=-1)
    y = p @ v
    y = y.transpose(0, 2, 1, 3).reshape(B, T, C)
    return y @ params["w_proj"] + params["b_proj"]


if __name__ == "__main__":
    # config: n_embd=32, n_head=4, bias=True, dropout=0.0, block_size>=T
    B, T, C, n_head = 2, 8, 32, 4

    key = jax.random.PRNGKey(0)
    kx, kw1, kb1, kw2, kb2 = jax.random.split(key, 5)

    x = jax.random.normal(kx, (B, T, C), dtype=jnp.float32)
    params = {
        "w_attn": 0.02 * jax.random.normal(kw1, (C, 3 * C), dtype=jnp.float32),
        "b_attn": 0.02 * jax.random.normal(kb1, (3 * C,), dtype=jnp.float32),
        "w_proj": 0.02 * jax.random.normal(kw2, (C, C), dtype=jnp.float32),
        "b_proj": 0.02 * jax.random.normal(kb2, (C,), dtype=jnp.float32),
    }

    out = causal_self_attention(x, params, n_head)
    out = jax.block_until_ready(out)

    ref = reference(x, params, n_head)
    assert out.shape == (B, T, C)
    # tolerance accounts for deliberate bf16 MXU inputs (f32 accumulation kept)
    assert jnp.allclose(out, ref, atol=1e-2, rtol=2e-2), "mismatch vs reference"

    print("KERNEL_OK")
</pallas_src>

<mosaic_0001>
module attributes {stable_mosaic.version = 11 : i64} {
  func.func @kernel(%arg0: i32, %arg1: i32, %arg2: i32, %arg3: memref<1x8x32xbf16, #tpu.memory_space<vmem>>, %arg4: memref<1x8x32xbf16, #tpu.memory_space<vmem>>, %arg5: memref<32x32xbf16, #tpu.memory_space<vmem>>, %arg6: memref<32x32xbf16, #tpu.memory_space<vmem>>, %arg7: memref<32x32xbf16, #tpu.memory_space<vmem>>, %arg8: memref<1x32xf32, #tpu.memory_space<vmem>>, %arg9: memref<1x32xf32, #tpu.memory_space<vmem>>, %arg10: memref<1x32xf32, #tpu.memory_space<vmem>>, %arg11: memref<32x32xbf16, #tpu.memory_space<vmem>>, %arg12: memref<1x32xf32, #tpu.memory_space<vmem>>, %arg13: memref<1x8x32xf32, #tpu.memory_space<vmem>>, %arg14: memref<4x8x8xbf16, #tpu.memory_space<vmem>>, %arg15: memref<4x8x1xf32, #tpu.memory_space<vmem>>, %arg16: memref<4x8x1xf32, #tpu.memory_space<vmem>>, %arg17: memref<4x8x8xf32, #tpu.memory_space<vmem>>) attributes {dimension_semantics = [#tpu.dimension_semantics<parallel>, #tpu.dimension_semantics<parallel>, #tpu.dimension_semantics<arbitrary>], iteration_bounds = array<i64: 2, 1, 1>, scalar_prefetch = 0 : i64, scratch_operands = 4 : i64, tpu.core_type = #tpu.core_type<tc>, window_params = [{transform_indices = @transform_0, window_bounds = array<i64: 1, 8, 32>}, {transform_indices = @transform_1, window_bounds = array<i64: 1, 8, 32>}, {pipeline_mode = #tpu.pipeline_mode<synchronous>, transform_indices = @transform_2, window_bounds = array<i64: 32, 32>}, {pipeline_mode = #tpu.pipeline_mode<synchronous>, transform_indices = @transform_3, window_bounds = array<i64: 32, 32>}, {pipeline_mode = #tpu.pipeline_mode<synchronous>, transform_indices = @transform_4, window_bounds = array<i64: 32, 32>}, {pipeline_mode = #tpu.pipeline_mode<synchronous>, transform_indices = @transform_5, window_bounds = array<i64: 1, 32>}, {pipeline_mode = #tpu.pipeline_mode<synchronous>, transform_indices = @transform_6, window_bounds = array<i64: 1, 32>}, {pipeline_mode = #tpu.pipeline_mode<synchronous>, transform_indices = @transform_7, window_bounds = array<i64: 1, 32>}, {pipeline_mode = #tpu.pipeline_mode<synchronous>, transform_indices = @transform_8, window_bounds = array<i64: 32, 32>}, {pipeline_mode = #tpu.pipeline_mode<synchronous>, transform_indices = @transform_9, window_bounds = array<i64: 1, 32>}, {transform_indices = @transform_10, window_bounds = array<i64: 1, 8, 32>}]} {
    %c0_i32 = arith.constant 0 : i32
    %0 = arith.cmpi eq, %arg2, %c0_i32 : i32
    %1 = arith.extui %0 : i1 to i32
    %c0_i32_0 = arith.constant 0 : i32
    %2 = arith.cmpi ne, %1, %c0_i32_0 : i32
    scf.if %2 {
      %c0 = arith.constant 0 : index
      %c0_5 = arith.constant 0 : index
      %c0_6 = arith.constant 0 : index
      %12 = vector.load %arg3[%c0, %c0_5, %c0_6] : memref<1x8x32xbf16, #tpu.memory_space<vmem>>, vector<1x8x32xbf16>
      %13 = vector.shape_cast %12 : vector<1x8x32xbf16> to vector<8x32xbf16>
      %c0_7 = arith.constant 0 : index
      %c0_8 = arith.constant 0 : index
      %14 = vector.load %arg5[%c0_7, %c0_8] : memref<32x32xbf16, #tpu.memory_space<vmem>>, vector<32x32xbf16>
      %cst = arith.constant dense<0.000000e+00> : vector<8x32xf32>
      %15 = tpu.matmul %13, %14, %cst {dimension_numbers = #tpu.dot_dimension_numbers<[1], [0], [0], [1], [0, 0, 1, 1], [], []>} : vector<8x32xbf16>, vector<32x32xbf16>, vector<8x32xf32> -> vector<8x32xf32>
      %c0_9 = arith.constant 0 : index
      %c0_10 = arith.constant 0 : index
      %16 = vector.load %arg8[%c0_9, %c0_10] : memref<1x32xf32, #tpu.memory_space<vmem>>, vector<1x32xf32>
      %17 = vector.broadcast %16 : vector<1x32xf32> to vector<8x32xf32>
      %18 = arith.addf %15, %17 : vector<8x32xf32>
      %cst_11 = arith.constant 0.353553385 : f32
      %19 = vector.broadcast %cst_11 : f32 to vector<8x32xf32>
      %20 = arith.mulf %18, %19 : vector<8x32xf32>
      %21 = vector.shape_cast %20 : vector<8x32xf32> to vector<8x4x8xf32>
      %22 = tpu.transpose %21, [1, 0, 2] : vector<8x4x8xf32> -> vector<4x8x8xf32>
      %23 = arith.truncf %22 : vector<4x8x8xf32> to vector<4x8x8xbf16>
      %c0_12 = arith.constant 0 : index
      %c0_13 = arith.constant 0 : index
      %c0_14 = arith.constant 0 : index
      %24 = vector.load %arg14[%c0_12, %c0_13, %c0_14] : memref<4x8x8xbf16, #tpu.memory_space<vmem>>, vector<4x8x8xbf16>
      tpu.vector_store %arg14[%c0_12, %c0_13, %c0_14], %23 {strides = array<i32>} : memref<4x8x8xbf16, #tpu.memory_space<vmem>>, vector<4x8x8xbf16>,
      %cst_15 = arith.constant -1.000000e+30 : f32
      %25 = vector.broadcast %cst_15 : f32 to vector<4x8x1xf32>
      %c0_16 = arith.constant 0 : index
      %c0_17 = arith.constant 0 : index
      %c0_18 = arith.constant 0 : index
      %26 = vector.load %arg15[%c0_16, %c0_17, %c0_18] : memref<4x8x1xf32, #tpu.memory_space<vmem>>, vector<4x8x1xf32>
      tpu.vector_store %arg15[%c0_16, %c0_17, %c0_18], %25 {strides = array<i32>} : memref<4x8x1xf32, #tpu.memory_space<vmem>>, vector<4x8x1xf32>,
      %cst_19 = arith.constant 0.000000e+00 : f32
      %27 = vector.broadcast %cst_19 : f32 to vector<4x8x1xf32>
      %c0_20 = arith.constant 0 : index
      %c0_21 = arith.constant 0 : index
      %c0_22 = arith.constant 0 : index
      %28 = vector.load %arg16[%c0_20, %c0_21, %c0_22] : memref<4x8x1xf32, #tpu.memory_space<vmem>>, vector<4x8x1xf32>
      tpu.vector_store %arg16[%c0_20, %c0_21, %c0_22], %27 {strides = array<i32>} : memref<4x8x1xf32, #tpu.memory_space<vmem>>, vector<4x8x1xf32>,
      %cst_23 = arith.constant 0.000000e+00 : f32
      %29 = vector.broadcast %cst_23 : f32 to vector<4x8x8xf32>
      %c0_24 = arith.constant 0 : index
      %c0_25 = arith.constant 0 : index
      %c0_26 = arith.constant 0 : index
      %30 = vector.load %arg17[%c0_24, %c0_25, %c0_26] : memref<4x8x8xf32, #tpu.memory_space<vmem>>, vector<4x8x8xf32>
      tpu.vector_store %arg17[%c0_24, %c0_25, %c0_26], %29 {strides = array<i32>} : memref<4x8x8xf32, #tpu.memory_space<vmem>>, vector<4x8x8xf32>,
    } else {
    }
    %c8_i32 = arith.constant 8 : i32
    %3 = arith.muli %arg2, %c8_i32 : i32
    %c8_i32_1 = arith.constant 8 : i32
    %4 = arith.muli %arg1, %c8_i32_1 : i32
    %c7_i32 = arith.constant 7 : i32
    %5 = arith.addi %4, %c7_i32 : i32
    %6 = arith.cmpi sle, %3, %5 : i32
    %7 = arith.extui %6 : i1 to i32
    %c0_i32_2 = arith.constant 0 : i32
    %8 = arith.cmpi ne, %7, %c0_i32_2 : i32
    scf.if %8 {
      %c0 = arith.constant 0 : index
      %c0_5 = arith.constant 0 : index
      %c0_6 = arith.constant 0 : index
      %12 = vector.load %arg4[%c0, %c0_5, %c0_6] : memref<1x8x32xbf16, #tpu.memory_space<vmem>>, vector<1x8x32xbf16>
      %13 = vector.shape_cast %12 : vector<1x8x32xbf16> to vector<8x32xbf16>
      %c0_7 = arith.constant 0 : index
      %c0_8 = arith.constant 0 : index
      %14 = vector.load %arg6[%c0_7, %c0_8] : memref<32x32xbf16, #tpu.memory_space<vmem>>, vector<32x32xbf16>
      %cst = arith.constant dense<0.000000e+00> : vector<8x32xf32>
      %15 = tpu.matmul %13, %14, %cst {dimension_numbers = #tpu.dot_dimension_numbers<[1], [0], [0], [1], [0, 0, 1, 1], [], []>} : vector<8x32xbf16>, vector<32x32xbf16>, vector<8x32xf32> -> vector<8x32xf32>
      %c0_9 = arith.constant 0 : index
      %c0_10 = arith.constant 0 : index
      %16 = vector.load %arg9[%c0_9, %c0_10] : memref<1x32xf32, #tpu.memory_space<vmem>>, vector<1x32xf32>
      %17 = vector.broadcast %16 : vector<1x32xf32> to vector<8x32xf32>
      %18 = arith.addf %15, %17 : vector<8x32xf32>
      %19 = arith.truncf %18 : vector<8x32xf32> to vector<8x32xbf16>
      %c0_11 = arith.constant 0 : index
      %c0_12 = arith.constant 0 : index
      %20 = vector.load %arg7[%c0_11, %c0_12] : memref<32x32xbf16, #tpu.memory_space<vmem>>, vector<32x32xbf16>
      %cst_13 = arith.constant dense<0.000000e+00> : vector<8x32xf32>
      %21 = tpu.matmul %13, %20, %cst_13 {dimension_numbers = #tpu.dot_dimension_numbers<[1], [0], [0], [1], [0, 0, 1, 1], [], []>} : vector<8x32xbf16>, vector<32x32xbf16>, vector<8x32xf32> -> vector<8x32xf32>
      %c0_14 = arith.constant 0 : index
      %c0_15 = arith.constant 0 : index
      %22 = vector.load %arg10[%c0_14, %c0_15] : memref<1x32xf32, #tpu.memory_space<vmem>>, vector<1x32xf32>
      %23 = vector.broadcast %22 : vector<1x32xf32> to vector<8x32xf32>
      %24 = arith.addf %21, %23 : vector<8x32xf32>
      %25 = arith.truncf %24 : vector<8x32xf32> to vector<8x32xbf16>
      %26 = vector.shape_cast %19 : vector<8x32xbf16> to vector<8x4x8xbf16>
      %27 = tpu.transpose %26, [1, 0, 2] : vector<8x4x8xbf16> -> vector<4x8x8xbf16>
      %28 = vector.shape_cast %25 : vector<8x32xbf16> to vector<8x4x8xbf16>
      %29 = tpu.transpose %28, [1, 0, 2] : vector<8x4x8xbf16> -> vector<4x8x8xbf16>
      %c0_16 = arith.constant 0 : index
      %c0_17 = arith.constant 0 : index
      %c0_18 = arith.constant 0 : index
      %30 = vector.load %arg14[%c0_16, %c0_17, %c0_18] : memref<4x8x8xbf16, #tpu.memory_space<vmem>>, vector<4x8x8xbf16>
      %cst_19 = arith.constant dense<0.000000e+00> : vector<4x8x8xf32>
      %31 = tpu.matmul %30, %27, %cst_19 {dimension_numbers = #tpu.dot_dimension_numbers<[2], [2], [1], [1], [0, 0, 0, 1, 1, 1], [0], [0]>} : vector<4x8x8xbf16>, vector<4x8x8xbf16>, vector<4x8x8xf32> -> vector<4x8x8xf32>
      %c8_i32_20 = arith.constant 8 : i32
      %32 = arith.muli %arg1, %c8_i32_20 : i32
      %33 = tpu.iota {dimensions = array<i32: 0>} : vector<8x8xi32>
      %34 = vector.broadcast %32 : i32 to vector<8x8xi32>
      %35 = arith.addi %34, %33 : vector<8x8xi32>
      %c8_i32_21 = arith.constant 8 : i32
      %36 = arith.muli %arg2, %c8_i32_21 : i32
      %37 = tpu.iota {dimensions = array<i32: 1>} : vector<8x8xi32>
      %38 = vector.broadcast %36 : i32 to vector<8x8xi32>
      %39 = arith.addi %38, %37 : vector<8x8xi32>
      %40 = arith.cmpi sle, %39, %35 : vector<8x8xi32>
      %41 = vector.shape_cast %40 : vector<8x8xi1> to vector<1x8x8xi1>
      %cst_22 = arith.constant -1.000000e+30 : f32
      %42 = vector.shape_cast %41 : vector<1x8x8xi1> to vector<1x8x8xi1>
      %43 = vector.broadcast %42 : vector<1x8x8xi1> to vector<4x8x8xi1>
      %44 = vector.broadcast %cst_22 : f32 to vector<4x8x8xf32>
      %45 = arith.select %43, %31, %44 : vector<4x8x8xi1>, vector<4x8x8xf32>
      %c0_23 = arith.constant 0 : index
      %c0_24 = arith.constant 0 : index
      %c0_25 = arith.constant 0 : index
      %46 = vector.load %arg15[%c0_23, %c0_24, %c0_25] : memref<4x8x1xf32, #tpu.memory_space<vmem>>, vector<4x8x1xf32>
      %cst_26 = arith.constant dense<0xFF800000> : vector<4x8xf32>
      %47 = vector.multi_reduction <maximumf>, %45, %cst_26 [2] : vector<4x8x8xf32> to vector<4x8xf32>
      %48 = vector.shape_cast %47 : vector<4x8xf32> to vector<4x8x1xf32>
      %49 = arith.maximumf %46, %48 : vector<4x8x1xf32>
      %50 = arith.subf %46, %49 : vector<4x8x1xf32>
      %51 = math.exp %50 : vector<4x8x1xf32>
      %52 = vector.broadcast %49 : vector<4x8x1xf32> to vector<4x8x8xf32>
      %53 = arith.subf %45, %52 : vector<4x8x8xf32>
      %54 = math.exp %53 : vector<4x8x8xf32>
      %c0_27 = arith.constant 0 : index
      %c0_28 = arith.constant 0 : index
      %c0_29 = arith.constant 0 : index
      %55 = vector.load %arg16[%c0_27, %c0_28, %c0_29] : memref<4x8x1xf32, #tpu.memory_space<vmem>>, vector<4x8x1xf32>
      %56 = arith.mulf %51, %55 : vector<4x8x1xf32>
      %cst_30 = arith.constant dense<0.000000e+00> : vector<4x8xf32>
      %57 = vector.multi_reduction <add>, %54, %cst_30 [2] : vector<4x8x8xf32> to vector<4x8xf32>
      %58 = vector.shape_cast %57 : vector<4x8xf32> to vector<4x8x1xf32>
      %59 = arith.addf %56, %58 : vector<4x8x1xf32>
      %c0_31 = arith.constant 0 : index
      %c0_32 = arith.constant 0 : index
      %c0_33 = arith.constant 0 : index
      %60 = vector.load %arg16[%c0_31, %c0_32, %c0_33] : memref<4x8x1xf32, #tpu.memory_space<vmem>>, vector<4x8x1xf32>
      tpu.vector_store %arg16[%c0_31, %c0_32, %c0_33], %59 {strides = array<i32>} : memref<4x8x1xf32, #tpu.memory_space<vmem>>, vector<4x8x1xf32>,
      %61 = arith.truncf %54 : vector<4x8x8xf32> to vector<4x8x8xbf16>
      %cst_34 = arith.constant dense<0.000000e+00> : vector<4x8x8xf32>
      %62 = tpu.matmul %61, %29, %cst_34 {dimension_numbers = #tpu.dot_dimension_numbers<[2], [1], [1], [2], [0, 0, 0, 1, 1, 2], [0], [0]>} : vector<4x8x8xbf16>, vector<4x8x8xbf16>, vector<4x8x8xf32> -> vector<4x8x8xf32>
      %c0_35 = arith.constant 0 : index
      %c0_36 = arith.constant 0 : index
      %c0_37 = arith.constant 0 : index
      %63 = vector.load %arg17[%c0_35, %c0_36, %c0_37] : memref<4x8x8xf32, #tpu.memory_space<vmem>>, vector<4x8x8xf32>
      %64 = vector.broadcast %51 : vector<4x8x1xf32> to vector<4x8x8xf32>
      %65 = arith.mulf %64, %63 : vector<4x8x8xf32>
      %66 = arith.addf %65, %62 : vector<4x8x8xf32>
      %c0_38 = arith.constant 0 : index
      %c0_39 = arith.constant 0 : index
      %c0_40 = arith.constant 0 : index
      %67 = vector.load %arg17[%c0_38, %c0_39, %c0_40] : memref<4x8x8xf32, #tpu.memory_space<vmem>>, vector<4x8x8xf32>
      tpu.vector_store %arg17[%c0_38, %c0_39, %c0_40], %66 {strides = array<i32>} : memref<4x8x8xf32, #tpu.memory_space<vmem>>, vector<4x8x8xf32>,
      %c0_41 = arith.constant 0 : index
      %c0_42 = arith.constant 0 : index
      %c0_43 = arith.constant 0 : index
      %68 = vector.load %arg15[%c0_41, %c0_42, %c0_43] : memref<4x8x1xf32, #tpu.memory_space<vmem>>, vector<4x8x1xf32>
      tpu.vector_store %arg15[%c0_41, %c0_42, %c0_43], %49 {strides = array<i32>} : memref<4x8x1xf32, #tpu.memory_space<vmem>>, vector<4x8x1xf32>,
    } else {
    }
    %c0_i32_3 = arith.constant 0 : i32
    %9 = arith.cmpi eq, %arg2, %c0_i32_3 : i32
    %10 = arith.extui %9 : i1 to i32
    %c0_i32_4 = arith.constant 0 : i32
    %11 = arith.cmpi ne, %10, %c0_i32_4 : i32
    scf.if %11 {
      %c0 = arith.constant 0 : index
      %c0_5 = arith.constant 0 : index
      %c0_6 = arith.constant 0 : index
      %12 = vector.load %arg17[%c0, %c0_5, %c0_6] : memref<4x8x8xf32, #tpu.memory_space<vmem>>, vector<4x8x8xf32>
      %c0_7 = arith.constant 0 : index
      %c0_8 = arith.constant 0 : index
      %c0_9 = arith.constant 0 : index
      %13 = vector.load %arg16[%c0_7, %c0_8, %c0_9] : memref<4x8x1xf32, #tpu.memory_space<vmem>>, vector<4x8x1xf32>
      %14 = vector.broadcast %13 : vector<4x8x1xf32> to vector<4x8x8xf32>
      %15 = arith.divf %12, %14 : vector<4x8x8xf32>
      %16 = tpu.transpose %15, [1, 0, 2] : vector<4x8x8xf32> -> vector<8x4x8xf32>
      %17 = vector.shape_cast %16 : vector<8x4x8xf32> to vector<8x32xf32>
      %18 = arith.truncf %17 : vector<8x32xf32> to vector<8x32xbf16>
      %c0_10 = arith.constant 0 : index
      %c0_11 = arith.constant 0 : index
      %19 = vector.load %arg11[%c0_10, %c0_11] : memref<32x32xbf16, #tpu.memory_space<vmem>>, vector<32x32xbf16>
      %cst = arith.constant dense<0.000000e+00> : vector<8x32xf32>
      %20 = tpu.matmul %18, %19, %cst {dimension_numbers = #tpu.dot_dimension_numbers<[1], [0], [0], [1], [0, 0, 1, 1], [], []>} : vector<8x32xbf16>, vector<32x32xbf16>, vector<8x32xf32> -> vector<8x32xf32>
      %c0_12 = arith.constant 0 : index
      %c0_13 = arith.constant 0 : index
      %21 = vector.load %arg12[%c0_12, %c0_13] : memref<1x32xf32, #tpu.memory_space<vmem>>, vector<1x32xf32>
      %22 = vector.broadcast %21 : vector<1x32xf32> to vector<8x32xf32>
      %23 = arith.addf %20, %22 : vector<8x32xf32>
      %c0_14 = arith.constant 0 : index
      %c0_15 = arith.constant 0 : index
      %c0_16 = arith.constant 0 : index
      %24 = vector.load %arg13[%c0_14, %c0_15, %c0_16] : memref<1x8x32xf32, #tpu.memory_space<vmem>>, vector<1x8x32xf32>
      %25 = vector.shape_cast %24 : vector<1x8x32xf32> to vector<8x32xf32>
      %26 = vector.shape_cast %23 : vector<8x32xf32> to vector<1x8x32xf32>
      tpu.vector_store %arg13[%c0_14, %c0_15, %c0_16], %26 {strides = array<i32>} : memref<1x8x32xf32, #tpu.memory_space<vmem>>, vector<1x8x32xf32>,
    } else {
    }
    return
  }
  func.func @transform_0(%arg0: i32, %arg1: i32, %arg2: i32) -> (i32, i32, i32) {
    %c0_i32 = arith.constant 0 : i32
    %c0_i32_0 = arith.constant 0 : i32
    return %arg0, %arg1, %c0_i32 : i32, i32, i32
  }
  func.func @transform_1(%arg0: i32, %arg1: i32, %arg2: i32) -> (i32, i32, i32) {
    %c0_i32 = arith.constant 0 : i32
    %c0_i32_0 = arith.constant 0 : i32
    return %arg0, %arg2, %c0_i32 : i32, i32, i32
  }
  func.func @transform_2(%arg0: i32, %arg1: i32, %arg2: i32) -> (i32, i32) {
    %c0_i32 = arith.constant 0 : i32
    %c0_i32_0 = arith.constant 0 : i32
    %c0_i32_1 = arith.constant 0 : i32
    return %c0_i32, %c0_i32_0 : i32, i32
  }
  func.func @transform_3(%arg0: i32, %arg1: i32, %arg2: i32) -> (i32, i32) {
    %c0_i32 = arith.constant 0 : i32
    %c0_i32_0 = arith.constant 0 : i32
    %c0_i32_1 = arith.constant 0 : i32
    return %c0_i32, %c0_i32_0 : i32, i32
  }
  func.func @transform_4(%arg0: i32, %arg1: i32, %arg2: i32) -> (i32, i32) {
    %c0_i32 = arith.constant 0 : i32
    %c0_i32_0 = arith.constant 0 : i32
    %c0_i32_1 = arith.constant 0 : i32
    return %c0_i32, %c0_i32_0 : i32, i32
  }
  func.func @transform_5(%arg0: i32, %arg1: i32, %arg2: i32) -> (i32, i32) {
    %c0_i32 = arith.constant 0 : i32
    %c0_i32_0 = arith.constant 0 : i32
    %c0_i32_1 = arith.constant 0 : i32
    return %c0_i32, %c0_i32_0 : i32, i32
  }
  func.func @transform_6(%arg0: i32, %arg1: i32, %arg2: i32) -> (i32, i32) {
    %c0_i32 = arith.constant 0 : i32
    %c0_i32_0 = arith.constant 0 : i32
    %c0_i32_1 = arith.constant 0 : i32
    return %c0_i32, %c0_i32_0 : i32, i32
  }
  func.func @transform_7(%arg0: i32, %arg1: i32, %arg2: i32) -> (i32, i32) {
    %c0_i32 = arith.constant 0 : i32
    %c0_i32_0 = arith.constant 0 : i32
    %c0_i32_1 = arith.constant 0 : i32
    return %c0_i32, %c0_i32_0 : i32, i32
  }
  func.func @transform_8(%arg0: i32, %arg1: i32, %arg2: i32) -> (i32, i32) {
    %c0_i32 = arith.constant 0 : i32
    %c0_i32_0 = arith.constant 0 : i32
    %c0_i32_1 = arith.constant 0 : i32
    return %c0_i32, %c0_i32_0 : i32, i32
  }
  func.func @transform_9(%arg0: i32, %arg1: i32, %arg2: i32) -> (i32, i32) {
    %c0_i32 = arith.constant 0 : i32
    %c0_i32_0 = arith.constant 0 : i32
    %c0_i32_1 = arith.constant 0 : i32
    return %c0_i32, %c0_i32_0 : i32, i32
  }
  func.func @transform_10(%arg0: i32, %arg1: i32, %arg2: i32) -> (i32, i32, i32) {
    %c0_i32 = arith.constant 0 : i32
    %c0_i32_0 = arith.constant 0 : i32
    return %arg0, %arg1, %c0_i32 : i32, i32, i32
  }
}

</mosaic_0001>

<bundles_post_ra>
// kernel: tpu_custom_call.1
= control target key start
LH: loop header
LB: loop body
LE: loop exit
PB: predicated region body
PF: predicated region fallthrough
CT: control target
= control target key end

     0   :  { %s3368_s0 = inlined_call_operand.hbm [shape: bf16[2,8,32], index: 0, kind: input, shape index: {}]   ;;  %s3369_s1 = inlined_call_operand.hbm [shape: bf16[2,8,32], index: 1, kind: input, shape index: {}]   ;;  %s3370_s2 = inlined_call_operand.hbm [shape: bf16[32,32], index: 2, kind: input, shape index: {}]   ;;  %s3371_s3 = inlined_call_operand.hbm [shape: bf16[32,32], index: 3, kind: input, shape index: {}]   ;;  %s3372_s4 = inlined_call_operand.hbm [shape: bf16[32,32], index: 4, kind: input, shape index: {}]   ;;  %s3373_s5 = inlined_call_operand.vmem [shape: f32[1,32], index: 5, kind: input, shape index: {}]   ;;  %s3374_s6 = inlined_call_operand.vmem [shape: f32[1,32], index: 6, kind: input, shape index: {}]   ;;  %s3375_s7 = inlined_call_operand.vmem [shape: f32[1,32], index: 7, kind: input, shape index: {}]   ;;  %s3376_s8 = inlined_call_operand.vmem [shape: bf16[32,32], index: 8, kind: input, shape index: {}]   ;;  %s3377_s9 = inlined_call_operand.vmem [shape: f32[1,32], index: 9, kind: input, shape index: {}]   ;;  %s3378_s10 = inlined_call_operand.hbm [shape: f32[2,8,32], index: 10, kind: output, shape index: {}]  }
   0x1   :  { %3387 = sst [smem:[#allocation24_spill]] %s3370_s2 }
   0x2   :  { %3388 = sst [smem:[#allocation25_spill]] %s3371_s3 }
   0x3   :  { %3389 = sst [smem:[#allocation26_spill]] %s3372_s4 }
   0x4   :  { %3390 = sst [smem:[#allocation27_spill]] %s3376_s8 }
   0x5   :  { %3391 = sst [smem:[#allocation28_spill]] %s3377_s9 }
   0x6   :  { %3392 = sst [smem:[#allocation29_spill]] %s3378_s10 }
   0x7   :  { %15 = vsyncpa [#allocation7], 0 }
   0x8   :  { %17 = vsyncpa [#allocation7 + $0x1], 0 }
   0x9   :  { %18 = vsyncpa [#allocation10], 0 }
   0xa   :  { %20 = vsyncpa [#allocation10 + $0x1], 0 }
   0xb   :  { %21 = vsyncpa [#allocation13], 0 }
   0xc   :  { %22 = vsyncpa [#allocation8], 0 }
   0xd   :  { %24 = vsyncpa [#allocation8 + $0x1], 0  ;;  %s2758_s13 = smov 0   ;;  %s2760_s14 = smov 0  }
   0xe   :  { %s2762_s15 = smov 0   ;;  %s2764_s16 = smov 0  }
   0xf   :  { %s2766_s17 = smov 0   ;;  %s2768_s18 = smov 0  }
  0x10 LB: > { %3393 = sst [smem:[#allocation21_spill]] %s2661_s13  ;;  %s2789_s19 = sadd.s32 4294967295, %s2681_s18   ;;  %s2681_s18 = sphi %s2768_s18, %s30_s18   ;;  %s2677_s17 = sphi %s2766_s17, %s3427_s17   ;;  %s2673_s16 = sphi %s2764_s16, %s3426_s16   ;;  %s2669_s15 = sphi %s2762_s15, %s3425_s15   ;;  %s2665_s14 = sphi %s2760_s14, %s3424_s14   ;;  %s2661_s13 = sphi %s2758_s13, %s3423_s13  }
  0x11   : > { %3394 = sst [smem:[#allocation22_spill]] %s2673_s16  ;;  %s2140_s20 = sadd.s32 4294967294, %s2681_s18  }
  0x12   : > { %p71_p0 = scmp.ne.s32.totalorder %s2665_s14, %s2661_s13  ;;  %p3381_p1 = scmp.eq.s32.totalorder %s2789_s19, 0 }
  0x13   : > { %p299_p3 = scmp.eq.s32.totalorder %s2140_s20, 1  ;;  %p2141_p5 = scmp.ge.s32.totalorder %s2681_s18, 1 }
  0x14   : > { %p2798_p4 = por %p3381_p1, %p71_p0  ;;  %p306_p7 = scmp.lt.s32.totalorder %s2681_s18, 3 }
  0x15   : > { %p2803_p6 = por %p299_p3, %p71_p0  ;;  %s2683_s24 = smov [#allocation11]  }
  0x16   : > { %s3395_s21 = scalar_select %p2798_p4, 1, 0 }
  0x17   : > { %s3396_s22 = scalar_select %p2803_p6, 1, 0 }
  0x18   : > { %p2808_p8 = pnand %p2141_p5, %p306_p7  ;;  %s318_s25 = sshll.u32 %s2683_s24, 4  ;;  %s2812_s25 = int_to_ptr.vmem [resolvable:$true] %s318_s25 }
  0x19   : > { %3397 = sst [smem:[#allocation23_spill]] %s3396_s22  ;;  %s2684_s27 = smov [#allocation12]  }
  0x1a   : > { %s3398_s23 = scalar_select %p2808_p8, 1, 0 }
  0x1b   : > { %p2315_p9 = pneg %p2808_p8  ;;  %s331_s28 = sshll.u32 %s2684_s27, 4  ;;  %s2823_s28 = int_to_ptr.vmem [resolvable:$true] %s331_s28 }
  0x1c   : > { %s2685_s29 = smov [#allocation14]   ;;  %s3400_s2 = sld [smem:[#allocation24_spill]] }
  0x1d   : > { %p2819_p11 = pnand %p2315_p9, %p3381_p1  ;;  %s2825_s30 = sshll.u32 %s2685_s29, 4  ;;  %s345_s30 = int_to_ptr.vmem [resolvable:$true] %s2825_s30 }
  0x1f   : > { %p2835_p13 = pneg %p2819_p11 }
  0x22   : > { %s2443_s20 = scalar_lea.hbm %s3400_s2, 256 }
  0x23   : > { %p2444_p12 = scmp.ne.s32.totalorder %s3400_s2, %s2443_s20  ;;  %p2450_p5 = scmp.lt.u32.totalorder %s2443_s20, %s3400_s2 }
  0x25   : > { %p2446_p0 = pnand %p2835_p13, %p2444_p12 }
  0x27   : > { %p2447_p3 = pneg %p2446_p0 }
  0x29   : > { %p2452_p7 = pnand %p2450_p5, %p2447_p3 }
  0x2b   : > { %2455 = shalt.err (!%p2452_p7)
}
  0x2c   : > { %s2456_s22 = scalar_lea.vmem %s2812_s25, 256  ;;  %p2464_p2 = scmp.lt.s32.totalorder %s2812_s25, %s2812_s25 }
  0x2d   : > { %p2457_p9 = scmp.ne.s32.totalorder %s2812_s25, %s2456_s22  ;;  %p2465_p6 = scmp.lt.s32.totalorder %s2456_s22, %s2456_s22 }
  0x2f   : > { %p2459_p10 = pnand %p2457_p9, %p2835_p13  ;;  %p2466_p12 = por %p2465_p6, %p2464_p2 }
  0x31   : > { %p2460_p1 = pneg %p2459_p10 }
  0x33   : > { %p2467_p0 = pnand %p2466_p12, %p2460_p1 }
  0x35   : > { %2470 = shalt.err (!%p2467_p0)
}
  0x36   : > { %s2686_s11 = smov 64   ;;  %s2687_s12 = smov 4  }
  0x37   : > { %2318 = dma.hbm_to_vmem [thread:$0]  (!%p2819_p11), %s3400_s2, 256, %s2812_s25, [#allocation10], %s2686_s11, %s2686_s11, %s2687_s12  }
  0x38   : > { %s3402_s3 = sld [smem:[#allocation25_spill]] }
  0x3e   : > { %s2471_s22 = scalar_lea.hbm %s3402_s3, 256 }
  0x3f   : > { %p2472_p1 = scmp.ne.s32.totalorder %s3402_s3, %s2471_s22  ;;  %p2478_p10 = scmp.lt.u32.totalorder %s2471_s22, %s3402_s3 }
  0x41   : > { %p2474_p2 = pnand %p2472_p1, %p2835_p13 }
  0x43   : > { %p2475_p6 = pneg %p2474_p2 }
  0x45   : > { %p2480_p3 = pnand %p2478_p10, %p2475_p6 }
  0x47   : > { %2483 = shalt.err (!%p2480_p3)
}
  0x48   : > { %s2484_s25 = scalar_lea.vmem %s2823_s28, 256  ;;  %p2492_p12 = scmp.lt.s32.totalorder %s2823_s28, %s2823_s28 }
  0x49   : > { %p2485_p5 = scmp.ne.s32.totalorder %s2823_s28, %s2484_s25  ;;  %p2493_p0 = scmp.lt.s32.totalorder %s2484_s25, %s2484_s25 }
  0x4b   : > { %p2487_p7 = pnand %p2485_p5, %p2835_p13  ;;  %p2494_p1 = por %p2493_p0, %p2492_p12 }
  0x4d   : > { %p2488_p9 = pneg %p2487_p7 }
  0x4f   : > { %p2495_p2 = pnand %p2494_p1, %p2488_p9 }
  0x51   : > { %2498 = shalt.err (!%p2495_p2)
}
  0x52   : > { %2321 = dma.hbm_to_vmem [thread:$0]  (!%p2819_p11), %s3402_s3, 256, %s2823_s28, [#allocation13], %s2686_s11, %s2686_s11, %s2687_s12  }
  0x53   : > { %s3403_s4 = sld [smem:[#allocation26_spill]] }
  0x59   : > { %s2499_s20 = scalar_lea.hbm %s3403_s4, 256 }
  0x5a   : > { %p2500_p6 = scmp.ne.s32.totalorder %s3403_s4, %s2499_s20  ;;  %p2506_p5 = scmp.lt.u32.totalorder %s2499_s20, %s3403_s4 }
  0x5c   : > { %p2502_p10 = pnand %p2500_p6, %p2835_p13 }
  0x5e   : > { %p2503_p3 = pneg %p2502_p10 }
  0x60   : > { %p2508_p7 = pnand %p2506_p5, %p2503_p3 }
  0x62   : > { %2511 = shalt.err (!%p2508_p7)
}
  0x63   : > { %s2512_s25 = scalar_lea.vmem %s345_s30, 256  ;;  %p2520_p1 = scmp.lt.s32.totalorder %s345_s30, %s345_s30 }
  0x64   : > { %p2513_p9 = scmp.ne.s32.totalorder %s345_s30, %s2512_s25  ;;  %p2521_p2 = scmp.lt.s32.totalorder %s2512_s25, %s2512_s25 }
  0x66   : > { %p2515_p12 = pnand %p2513_p9, %p2835_p13  ;;  %p2522_p4 = por %p2521_p2, %p2520_p1 }
  0x68   : > { %p2516_p0 = pneg %p2515_p12 }
  0x6a   : > { %p2523_p8 = pnand %p2522_p4, %p2516_p0 }
  0x6c   : > { %2526 = shalt.err (!%p2523_p8)
}
  0x6d   : > { %2324 = dma.hbm_to_vmem [thread:$0]  (!%p2819_p11), %s3403_s4, 256, %s345_s30, [#allocation13], %s2686_s11, %s2686_s11, %s2687_s12  }
  0x6e   : > { %s58_s13 = sadd.s32 1, %s2669_s15  ;;  %s49_s26 = sadd.s32 1, %s2677_s17 }
  0x6f   : > { %p65_p4 = scmp.ne.s32.totalorder %s2669_s15, %s2665_s14  ;;  %p51_p8 = scmp.ge.s32.totalorder %s49_s26, 2 }
  0x70   : > { %p66_p13 = scmp.eq.s32.totalorder %s2681_s18, 0  ;;  %p3404_p6 = scmp.eq.s32.totalorder %s2789_s19, 1 }
  0x71   : > { %p2339_p3 = scmp.lt.s32.totalorder %s2681_s18, 2  ;;  %s3429_s26 = smov (%p51_p8, %s49_s26), 0 }
  0x72   : > { %p2914_p10 = por %p3404_p6, %p65_p4  ;;  %p67_p5 = por %p66_p13, %p65_p4 }
  0x73   : > { %s373_s10 = sand.u32 1, %s2669_s15   ;;  %s53_s16 = ssub.s32 %s2677_s17, %s3429_s26 }
  0x74   : > { %s3405_s9 = scalar_select %p2914_p10, 1, 0 }
  0x75   : > { %p56_p11 = scmp.eq.s32.totalorder %s53_s16, 0  ;;  %s2924_s30 = sshll.u32 %s373_s10, 2 }
  0x76   : > { %s2147_s11 = sshll.u32 %s2677_s17, 6  ;;  %s377_s29 = scalar_lea.vmem [#allocation6], %s2924_s30 }
  0x77   : > { %s2928_s12 = scalar_select %p56_p11, %s2669_s15, %s58_s13  }
  0x78   : > { %s2933_s27 = scalar_lea.hbm %s3368_s0, %s2147_s11  ;;  %s385_s22 = sshll.u32 %s377_s29, 4  ;;  %s2936_s22 = int_to_ptr.vmem [resolvable:$true] %s385_s22 }
  0x79   : > { %p2940_p7 = pnand %p2339_p3, %p67_p5  ;;  %s2947_s13 = scalar_lea.hbm %s3369_s1, %s2147_s11 }
  0x7a   : > { %s392_s16 = sand.u32 1, %s2681_s18   ;;  %s374_s20 = scalar_lea.sflag [#allocation7], %s373_s10 }
  0x7b   : > { %s2527_s24 = scalar_lea.hbm %s2933_s27, 64  ;;  %p2529_p12 = pneg %p2940_p7 }
  0x7c   : > { %p2528_p9 = scmp.ne.s32.totalorder %s2933_s27, %s2527_s24  ;;  %s2532_s3 = scalar_lea.hbm %s3368_s0, 128 }
  0x7d   : > { %p2533_p2 = scmp.lt.u32.totalorder %s2933_s27, %s3368_s0  ;;  %p2534_p4 = scmp.lt.u32.totalorder %s2532_s3, %s2527_s24 }
  0x7e   : > { %p2530_p0 = pnand %p2529_p12, %p2528_p9  ;;  %p2536_p13 = scmp.lt.u32.totalorder %s2527_s24, %s2933_s27 }
  0x7f   : > { %p2535_p8 = por %p2534_p4, %p2533_p2 }
  0x80   : > { %p2531_p1 = pneg %p2530_p0 }
  0x81   : > { %p2537_p6 = por %p2536_p13, %p2535_p8 }
  0x83   : > { %p2538_p3 = pnand %p2537_p6, %p2531_p1 }
  0x85   : > { %2541 = shalt.err (!%p2538_p3)
}
  0x86   : > { %s2542_s10 = scalar_lea.vmem %s2936_s22, 64  ;;  %s2688_s2 = smov [#allocation6]  }
  0x87   : > { %p2543_p5 = scmp.ne.s32.totalorder %s2936_s22, %s2542_s10  ;;  %s2547_s11 = sshll.u32 %s2688_s2, 4  ;;  %s2548_s11 = int_to_ptr.vmem [resolvable:$false] %s2547_s11 }
  0x88   : > { %s2549_s4 = scalar_lea.vmem %s2548_s11, 128  ;;  %p2550_p0 = scmp.lt.s32.totalorder %s2936_s22, %s2548_s11 }
  0x89   : > { %p2545_p11 = pnand %p2543_p5, %p2529_p12  ;;  %p2551_p2 = scmp.lt.s32.totalorder %s2549_s4, %s2542_s10 }
  0x8b   : > { %p2546_p9 = pneg %p2545_p11  ;;  %p2552_p4 = por %p2551_p2, %p2550_p0 }
  0x8d   : > { %p2553_p8 = pnand %p2552_p4, %p2546_p9 }
  0x8f   : > { %2556 = shalt.err (!%p2553_p8)
}
  0x90   : > { %2328 = dma.hbm_to_vmem [thread:$0]  (!%p2940_p7), %s2933_s27, 64, %s2936_s22, %s374_s20  }
  0x91   : > { %s396_s3 = scalar_lea.vmem [#allocation9], %s2924_s30  ;;  %s393_s24 = scalar_lea.sflag [#allocation10], %s392_s16 }
  0x92   : > { %s404_s8 = sshll.u32 %s396_s3, 4  ;;  %s2557_s29 = scalar_lea.hbm %s2947_s13, 64  ;;  %s405_s8 = int_to_ptr.vmem [resolvable:$true] %s404_s8 }
  0x93   : > { %p2558_p1 = scmp.ne.s32.totalorder %s2947_s13, %s2557_s29  ;;  %s2562_s2 = scalar_lea.hbm %s3369_s1, 128 }
  0x94   : > { %p2563_p3 = scmp.lt.u32.totalorder %s2947_s13, %s3369_s1  ;;  %p2564_p5 = scmp.lt.u32.totalorder %s2562_s2, %s2557_s29 }
  0x95   : > { %p2560_p13 = pnand %p2558_p1, %p2529_p12  ;;  %p2566_p9 = scmp.lt.u32.totalorder %s2557_s29, %s2947_s13 }
  0x96   : > { %p2565_p11 = por %p2564_p5, %p2563_p3 }
  0x97   : > { %p2561_p6 = pneg %p2560_p13 }
  0x98   : > { %p2567_p0 = por %p2566_p9, %p2565_p11 }
  0x9a   : > { %p2568_p2 = pnand %p2567_p0, %p2561_p6 }
  0x9c   : > { %2571 = shalt.err (!%p2568_p2)
}
  0x9d   : > { %s2572_s30 = scalar_lea.vmem %s405_s8, 64  ;;  %s2689_s27 = smov [#allocation9]  }
  0x9e   : > { %p2573_p4 = scmp.ne.s32.totalorder %s405_s8, %s2572_s30  ;;  %s2577_s22 = sshll.u32 %s2689_s27, 4  ;;  %s2578_s22 = int_to_ptr.vmem [resolvable:$false] %s2577_s22 }
  0x9f   : > { %s2579_s16 = scalar_lea.vmem %s2578_s22, 128  ;;  %p2580_p13 = scmp.lt.s32.totalorder %s405_s8, %s2578_s22 }
  0xa0   : > { %p2575_p8 = pnand %p2573_p4, %p2529_p12  ;;  %p2581_p10 = scmp.lt.s32.totalorder %s2579_s16, %s2572_s30 }
  0xa2   : > { %p2576_p1 = pneg %p2575_p8  ;;  %p2582_p3 = por %p2581_p10, %p2580_p13 }
  0xa4   : > { %p2583_p5 = pnand %p2582_p3, %p2576_p1 }
  0xa6   : > { %2586 = shalt.err (!%p2583_p5)
}
  0xa7   : > { %2331 = dma.hbm_to_vmem [thread:$0]  (!%p2940_p7), %s2947_s13, 64, %s405_s8, %s393_s24  }
  0xa8   : > { %p3407_p6 = scmp.ne.s32.totalorder %s3398_s23, 0 }
  0xa9   : > { %s3000_s20 = sand.u32 (!%p3407_p6), 1, %s2665_s14   ;;  %p3408_p12 = scmp.ne.s32.totalorder (!%p3407_p6), %s3395_s21, 0 }
  0xaa   : > { %413 = sbr.rel (%p3407_p6) target bundleno = 1744 (0x6d0), region = 60  ;;  %s2151_s3 = sshll.u32 (!%p3407_p6), %s3000_s20, 2 }
  0xab   : > { %s416_s29 = scalar_lea.sflag (!%p3407_p6), [#allocation7], %s3000_s20  ;;  %s419_s28 = scalar_lea.vmem (!%p3407_p6), [#allocation6], %s2151_s3 }
  0xb1   : > { %2640 = dma.done.wait (%p3408_p12), %s416_s29, 64  }
  0xb2   : > { %2642 = vsyncadd (%p3408_p12), %s416_s29, 4294967232  ;;  %s424_s25 = sand.u32 1, %s2789_s19   ;;  %s428_s23 = scalar_lea.vmem [#allocation9], %s2151_s3 }
  0xb3   : > { %s425_s13 = scalar_lea.sflag [#allocation10], %s424_s25 }
  0xb4   : > { %2644 = dma.done.wait (%p3408_p12), %s425_s13, 64  }
  0xb5   : > { %2646 = vsyncadd (%p3408_p12), %s425_s13, 4294967232  ;;  %p3409_p10 = scmp.eq.s32.totalorder %s2789_s19, 0 }
  0xb7   : > { %2648 = dma.done.wait (%p3409_p10), [#allocation10], 256   ;;  %p3410_p7 = pmov %p3409_p10 }
  0xb9   : > { %2650 = vsyncadd (%p3410_p7), [#allocation10], 4294967040  ;;  %p3411_p11 = pmov %p3410_p7 }
  0xba   : > { %p3412_p9 = pmov %p3410_p7 }
  0xbb   : > { %2652 = dma.done.wait (%p3411_p11), [#allocation13], 512  }
  0xbc   : > { %2654 = vsyncadd (%p3412_p9), [#allocation13], 4294966784  ;;  %v2690_v0 = vmov 0.0   ;;  %vm2691_vm0 = vmmov 0   ;;  %v2411_v1 = vld [vmem:[#allocation12] sm:$0xff]   ;;  %v2412_v2 = vld [vmem:[#allocation11] sm:$0xff]   ;;  %v571_v26 = vlaneseq }
  0xbd   : > { %2225 = vmatprep.subr.bf16.mxu1 %v2690_v0  ;;  %2217 = vmatprep.subr.bf16.mxu0 %v2690_v0  ;;  %v2413_v3 = vld [vmem:[#allocation12 + $0x8] sm:$0xff]   ;;  %v2414_v4 = vld [vmem:[#allocation11 + $0x8] sm:$0xff]   ;;  %vm511_vm1 = vcmask 261120   ;;  %v487_v6 = vld [vmem:[%s419_s28] sm:$0xf]  ;;  %v2692_v7 = vmov 0  }
  0xbe   : > { %2229 = vmatprep.mubr.msk.bf16.mxu1 %vm2691_vm0, %v2690_v0  ;;  %2221 = vmatprep.mubr.msk.bf16.mxu0 %vm2691_vm0, %v2690_v0  ;;  %v732_v5 = vld [vmem:[%s428_s23] sm:$0xf]  ;;  %v2163_v8 = vld [vmem:[%s3374_s6] ss:$0 sm:$0xff]  ;;  %s2693_s10 = smov 104   ;;  %s2694_s2 = smov 120  }
  0xbf   : > { %2226 = vmatpush3.bf16.msra.mxu1 %v2411_v1  ;;  %2218 = vmatpush3.bf16.msra.mxu0 %v2412_v2  ;;  %v2157_v9 = vld [vmem:[%s3373_s5] ss:$0 sm:$0xff]  ;;  %s2695_s11 = smov 112   ;;  %v2415_v22 = vld [vmem:[#allocation14] sm:$0xff]   ;;  %v2416_v23 = vld [vmem:[#allocation14 + $0x8] sm:$0xff]   ;;  %vm720_vm2 = vcmask 64512  }
  0xc0   : > { %2227 = vmatprep.subr.bf16.mxu1 %v2690_v0  ;;  %2219 = vmatprep.subr.bf16.mxu0 %v2690_v0  ;;  %721 = vst.msk [vmem:[#allocation5] sm:$0xff] %vm720_vm2, %v2690_v0  ;;  %722 = vst.msk [vmem:[#allocation5 + $0x8] sm:$0xff] %vm720_vm2, %v2690_v0  ;;  %v2696_v24 = vmov 1983009808   ;;  %v2697_v27 = vmov 1934713408  }
  0xc1   : > { %2410 = vset.pattern.permute.xlu0 %v2692_v7  ;;  %2409 = vset.pattern.permute.xlu1 %v2692_v7  ;;  %723 = vst.msk [vmem:[#allocation5 + $0x10] sm:$0xff] %vm720_vm2, %v2690_v0  ;;  %724 = vst.msk [vmem:[#allocation5 + $0x18] sm:$0xff] %vm720_vm2, %v2690_v0  ;;  %v569_v25 = vunpack.c.l.s4 %v2696_v24  ;;  %v601_v28 = vunpack.c.l.s4 %v2697_v27  ;;  %v3070_v30 = vshrl.u32 %v571_v26, 7  ;;  %vm706_vm3 = vcmask 60416   ;;  %s3413_s16 = sld [smem:[#allocation27_spill]]  ;;  %s2699_s25 = smov 16  }
  0xc2   : > { %vm711_vm4 = vcmask 7168   ;;  %vm1505_vm6 = vcmask 1043456   ;;  %s2700_s13 = smov 8   ;;  %s3415_s23 = sld [smem:[#allocation22_spill]]  ;;  %vm1916_vm7 = vcmask 130048   ;;  %vm1918_vm8 = vcmask 195584  }
  0xc3   : > { %2228 = vmatpush3.bf16.msra.mxu1 %v2413_v3  ;;  %2220 = vmatpush3.bf16.msra.mxu0 %v2414_v4  ;;  %v570_v29 = vunpack.c.0.s8 %v569_v25  ;;  %v602_v31 = vunpack.c.0.s8 %v601_v28  ;;  %716 = vst.msk [vmem:[#allocation4] sm:$0xff] %vm711_vm4, %v2690_v0  ;;  %717 = vst.msk [vmem:[#allocation4 + $0x8] sm:$0xff] %vm711_vm4, %v2690_v0  ;;  %s2701_s19 = smov 24   ;;  %s2156_s21 = sshll.u32 %s3000_s20, 3 }
  0xc4   : > { %2241 = vmatprep.subr.bf16.mxu1 %v2690_v0  ;;  %2233 = vmatprep.subr.bf16.mxu0 %v2690_v0  ;;  %718 = vst.msk [vmem:[#allocation4 + $0x10] sm:$0xff] %vm711_vm4, %v2690_v0  ;;  %719 = vst.msk [vmem:[#allocation4 + $0x18] sm:$0xff] %vm711_vm4, %v2690_v0  ;;  %s3417_s22 = sld [smem:[#allocation29_spill]]  ;;  %s1990_s29 = scalar_lea.sflag [#allocation8], %s3000_s20 }
  0xc5   : > { %v3073_v32 = vsub.s32 %v570_v29, %v3070_v30  ;;  %v3077_v36 = vsub.s32 %v602_v31, %v3070_v30  ;;  %p3418_p2 = scmp.ne.s32.totalorder %s3405_s9, 0 }
  0xc6   : > { %2230 = vmatmul.mubr.msk.bf16.vlgmr.msra.gmra.mrb[0].mxu1 %vm511_vm1, %v732_v5  ;;  %2222 = vmatmul.mubr.msk.bf16.vlgmr.msra.gmra.mrb[0].mxu0 %vm511_vm1, %v487_v6 }
  0xc7   : > { %2243 = vmatprep.mubr.msk.bf16.mxu1 %vm2691_vm0, %v2690_v0  ;;  %2237 = vmatprep.mubr.msk.bf16.mxu0 %vm2691_vm0, %v2690_v0  ;;  %s3414_s3 = smov %s3413_s16 }
  0xc8   : > { %2234 = vmatpush3.bf16.msra.mxu0 %v2415_v22 }
  0xc9   : > { %2235 = vmatprep.subr.bf16.mxu0 %v2690_v0 }
  0xcc   : > { %2236 = vmatpush3.bf16.msra.mxu0 %v2416_v23 }
  0xcd   : > { %2247 = vmatprep.subr.bf16.mxu0 %v2690_v0 }
  0xcf   : > { %2238 = vmatmul.mubr.msk.bf16.vlgmr.msra.gmra.mrb[4].mxu0 %vm511_vm1, %v732_v5 }
  0xd0   : > { %2249 = vmatprep.mubr.msk.bf16.mxu0 %vm2691_vm0, %v2690_v0 }
 0x199   : > { %v794_v10 = vpop.f32.mrb[0].mxu1  ;;  %v549_v12 = vpop.f32.mrb[0].mxu0 }
 0x19a   : > { %v795_v11 = vadd.f32 %v2163_v8, %v794_v10  ;;  %v2231_v13 = vpop.f32.mrb[1].mxu1  ;;  %v550_v14 = vadd.f32 %v2157_v9, %v549_v12  ;;  %v2223_v15 = vpop.f32.mrb[1].mxu0 }
 0x19b   : > { %v797_v16 = vpop.f32.mrb[2].mxu1  ;;  %v552_v18 = vpop.f32.mrb[2].mxu0 }
 0x19c   : > { %v800_v17 = vpack.c.bf16 %v795_v11, %v795_v11  ;;  %v2232_v19 = vpop.f32.mrb[3].mxu1  ;;  %v2224_v20 = vpop.f32.mrb[3].mxu0  ;;  %v3045_v21 = vmul.f32 0.35355338, %v550_v14 }
 0x19e   : > { %870 = vrot.lane.b32.xlu1 %v800_v17, %s2693_s10  ;;  %866 = vrot.lane.b32.xlu0 %v800_v17, %s2694_s2  ;;  %v878_v45 = vrot.slane %v800_v17, %v3073_v32 }
 0x1a2   : > { %868 = vrot.lane.b32.xlu0 %v800_v17, %s2695_s11  ;;  %557 = vrot.lane.b32.xlu1 %v3045_v21, %s2694_s2 }
 0x1a6   : > { %560 = vrot.lane.b32.xlu0 %v3045_v21, %s2695_s11  ;;  %563 = vrot.lane.b32.xlu1 %v3045_v21, %s2693_s10 }
 0x210   : > { %v871_v33 = vpop.permute.xlu1 %870  ;;  %v867_v34 = vpop.permute.xlu0 %866 }
 0x211   : > { %v920_v35 = vrot.slane %v871_v33, %v3073_v32  ;;  %v912_v37 = vrot.slane %v867_v34, %v3073_v32 }
 0x213   : > { %v921_v38 = vcombine.low %v912_v37, %v920_v35  ;;  %v922_v39 = vcombine.high %v912_v37, %v920_v35 }
 0x214   : > { %v869_v40 = vpop.permute.xlu0 %868  ;;  %v558_v41 = vpop.permute.xlu1 %557 }
 0x215   : > { %v929_v42 = vrot.slane %v921_v38, %v3077_v36  ;;  %v936_v43 = vrot.slane %v922_v39, %v3077_v36  ;;  %v886_v44 = vrot.slane %v869_v40, %v3073_v32 }
 0x217   : > { %v937_v46 = vcombine.high %v929_v42, %v2692_v7  ;;  %v938_v47 = vcombine.high %v936_v43, %v2692_v7  ;;  %v887_v48 = vcombine.low %v878_v45, %v886_v44  ;;  %v888_v49 = vcombine.high %v878_v45, %v886_v44 }
 0x218   : > { %v561_v50 = vpop.permute.xlu0 %560  ;;  %v564_v51 = vpop.permute.xlu1 %563  ;;  %v944_v52 = vshrl.u32 %v929_v42, 16  ;;  %v960_v53 = vshrl.u32 %v936_v43, 16 }
 0x219   : > { %v566_v54 = vcombine.low %v3045_v21, %v561_v50  ;;  %v567_v55 = vcombine.high %v3045_v21, %v561_v50  ;;  %v895_v56 = vrot.slane %v887_v48, %v3077_v36  ;;  %v902_v57 = vrot.slane %v888_v49, %v3077_v36 }
 0x21a   : > { %v582_v58 = vcombine.low %v558_v41, %v564_v51  ;;  %v583_v59 = vcombine.high %v558_v41, %v564_v51  ;;  %v952_v60 = vshrl.u32 %v937_v46, 16  ;;  %v968_v61 = vshrl.u32 %v938_v47, 16 }
 0x21b   : > { %v574_v62 = vrot.slane %v566_v54, %v3073_v32  ;;  %v581_v63 = vrot.slane %v567_v55, %v3073_v32  ;;  %v903_v1 = vcombine.high %v895_v56, %v2692_v7  ;;  %v904_v2 = vcombine.high %v902_v57, %v2692_v7 }
 0x21c   : > { %v941_v3 = vpack.i.b16 %v929_v42, %v895_v56  ;;  %v943_v4 = vshrl.u32 %v895_v56, 16  ;;  %v957_v5 = vpack.i.b16 %v936_v43, %v902_v57  ;;  %v959_v6 = vshrl.u32 %v902_v57, 16 }
 0x21d   : > { %v590_v8 = vrot.slane %v582_v58, %v3073_v32  ;;  %v597_v9 = vrot.slane %v583_v59, %v3073_v32  ;;  %v949_v11 = vpack.i.b16 %v937_v46, %v903_v1  ;;  %v951_v12 = vshrl.u32 %v903_v1, 16 }
 0x21e   : > { %v945_v10 = vpack.i.b16 %v944_v52, %v943_v4  ;;  %v965_v13 = vpack.i.b16 %v938_v47, %v904_v2  ;;  %v961_v14 = vpack.i.b16 %v960_v53, %v959_v6  ;;  %v967_v15 = vshrl.u32 %v904_v2, 16 }
 0x21f   : > { %v971_v16 = vcombine.low %v941_v3, %v957_v5  ;;  %v598_v17 = vcombine.low %v574_v62, %v590_v8  ;;  %v953_v18 = vpack.i.b16 %v952_v60, %v951_v12  ;;  %v599_v20 = vcombine.high %v574_v62, %v590_v8 }
 0x220   : > { %v979_v19 = vcombine.low %v949_v11, %v965_v13  ;;  %v614_v21 = vcombine.low %v581_v63, %v597_v9  ;;  %v969_v22 = vpack.i.b16 %v968_v61, %v967_v15  ;;  %v996_v24 = vcombine.low %v945_v10, %v961_v14 }
 0x221   : > { %v978_v23 = vrot.slane %v971_v16, %v3073_v32  ;;  %v606_v25 = vrot.slane %v598_v17, %v3077_v36  ;;  %v613_v27 = vrot.slane %v599_v20, %v3077_v36  ;;  %v615_v28 = vcombine.high %v581_v63, %v597_v9 }
 0x222   : > { %v622_v29 = vrot.slane %v614_v21, %v3077_v36  ;;  %v986_v31 = vrot.slane %v979_v19, %v3073_v32  ;;  %v1004_v33 = vcombine.low %v953_v18, %v969_v22  ;;  %v1003_v39 = vrot.slane %v996_v24, %v3073_v32  ;;  %v858_v22 = vpop.f32.mrb[4].mxu0 }
 0x223   : > { %v629_v34 = vrot.slane %v615_v28, %v3077_v36  ;;  %v634_v35 = vcombine.low %v606_v25, %v613_v27  ;;  %v2161_v37 = vcombine.high %v606_v25, %v613_v27  ;;  %v2698_v27 = vmov -1e+30  }
 0x224   : > { %v987_v38 = vcombine.low %v978_v23, %v986_v31  ;;  %v1011_v40 = vrot.slane %v1004_v33, %v3073_v32  ;;  %v2239_v23 = vpop.f32.mrb[5].mxu0  ;;  %712 = vst.msk [vmem:[#allocation3] sm:$0xff] %vm711_vm4, %v2698_v27  ;;  %713 = vst.msk [vmem:[#allocation3 + $0x8] sm:$0xff] %vm711_vm4, %v2698_v27  ;;  %v1395_v28 = vand.u32 127, %v571_v26 }
 0x225   : > { %v641_v41 = vrot.slane %v634_v35, %v3073_v32  ;;  %v649_v42 = vrot.slane %v2161_v37, %v3073_v32  ;;  %v650_v43 = vcombine.low %v622_v29, %v629_v34  ;;  %v2162_v44 = vcombine.high %v622_v29, %v629_v34  ;;  %v861_v24 = vpop.f32.mrb[6].mxu0  ;;  %714 = vst.msk [vmem:[#allocation3 + $0x10] sm:$0xff] %vm711_vm4, %v2698_v27 }
 0x226   : > { %v994_v45 = vrot.slane %v987_v38, %v3077_v36  ;;  %v1012_v46 = vcombine.low %v1003_v39, %v1011_v40  ;;  %v2240_v25 = vpop.f32.mrb[7].mxu0  ;;  %715 = vst.msk [vmem:[#allocation3 + $0x18] sm:$0xff] %vm711_vm4, %v2698_v27  ;;  %vm1398_vm5 = vcmp.le.s32.totalorder %v1395_v28, %v3070_v30 }
 0x227   : > { %v657_v47 = vrot.slane %v650_v43, %v3073_v32  ;;  %v665_v48 = vrot.slane %v2162_v44, %v3073_v32  ;;  %v666_v49 = vcombine.low %v641_v41, %v649_v42  ;;  %v667_v50 = vcombine.high %v641_v41, %v649_v42 }
 0x228   : > { %v1019_v51 = vrot.slane %v1012_v46, %v3077_v36  ;;  %v1024_v57 = vshrl.u32 %v994_v45, 16  ;;  %v995_v6 = vcombine.high %v994_v45, %v2692_v7 }
 0x229   : > { %v674_v52 = vrot.slane %v666_v49, %v3077_v36  ;;  %v681_v53 = vrot.slane %v667_v50, %v3077_v36  ;;  %v682_v54 = vcombine.low %v657_v47, %v665_v48  ;;  %v683_v55 = vcombine.high %v657_v47, %v665_v48 }
 0x22a   : > { %v1023_v56 = vpack.i.b16 %v1019_v51, %v994_v45  ;;  %v1025_v58 = vshrl.u32 %v1019_v51, 16  ;;  %v1020_v63 = vcombine.high %v1019_v51, %v2692_v7  ;;  %v1030_v13 = vshrl.u32 %v995_v6, 16  ;;  %v2167_v51 = vld [vmem:[%s3375_s7] ss:$0 sm:$0xff] }
 0x22b   : > { %v690_v59 = vrot.slane %v682_v54, %v3077_v36  ;;  %v697_v60 = vrot.slane %v683_v55, %v3077_v36  ;;  %v859_v55 = vadd.f32 %v2167_v51, %v858_v22  ;;  %v3182_v30 = vld [vmem:[#allocation3 + $0x8] sm:$0xff] }
 0x22c   : > { %v1210_v61 = vsel %vm720_vm2, %v1023_v56, 0  ;;  %v1026_v62 = vpack.i.b16 %v1025_v58, %v1024_v57  ;;  %v1031_v12 = vshrl.u32 %v1020_v63, 16  ;;  %v1029_v14 = vpack.i.b16 %v1020_v63, %v995_v6  ;;  %v3180_v58 = vld [vmem:[#allocation3] sm:$0xff] }
 0x22d   : > { %v698_v1 = vcombine.low %v674_v52, %v690_v59  ;;  %v699_v2 = vcombine.high %v674_v52, %v690_v59  ;;  %v700_v3 = vcombine.low %v681_v53, %v697_v60  ;;  %v701_v4 = vcombine.high %v681_v53, %v697_v60  ;;  %2242 = vmatpush3.bf16.xpose.msra.mxu1 %v1210_v61 }
 0x22e   : > { %v1256_v5 = vsel %vm720_vm2, %v1026_v62, 0  ;;  %2253 = vmatprep.subr.bf16.mxu1 %v2690_v0  ;;  %v1032_v15 = vpack.i.b16 %v1031_v12, %v1030_v13  ;;  %v1302_v18 = vsel %vm720_vm2, %v1029_v14, 0  ;;  %v864_v57 = vpack.c.bf16 %v859_v55, %v859_v55 }
 0x22f   : > { %v702_v8 = vpack.c.bf16 %v698_v1, %v698_v1  ;;  %v703_v9 = vpack.c.bf16 %v699_v2, %v699_v2  ;;  %v704_v10 = vpack.c.bf16 %v700_v3, %v700_v3  ;;  %v705_v11 = vpack.c.bf16 %v701_v4, %v701_v4  ;;  %2248 = vmatpush3.bf16.xpose.msra.mxu0 %v1256_v5  ;;  %v3200_v3 = vld [vmem:[#allocation3 + $0x10] sm:$0xff] }
 0x230   : > { %2259 = vmatprep.subr.bf16.mxu0 %v2690_v0  ;;  %v1348_v19 = vsel %vm720_vm2, %v1032_v15, 0 }
 0x231   : > { %707 = vst.msk [vmem:[#allocation2] sm:$0xf] %vm706_vm3, %v702_v8  ;;  %708 = vst.msk [vmem:[#allocation2 + $0x4] sm:$0xf] %vm706_vm3, %v703_v9 }
 0x232   : > { %709 = vst.msk [vmem:[#allocation2 + $0x8] sm:$0xf] %vm706_vm3, %v704_v10  ;;  %710 = vst.msk [vmem:[#allocation2 + $0xc] sm:$0xf] %vm706_vm3, %v705_v11  ;;  %v3207_v10 = vld [vmem:[#allocation3 + $0x18] sm:$0xff] }
 0x238   : > { %v1201_v16 = vld [vmem:[#allocation2] sm:$0xf]  ;;  %v1202_v17 = vld [vmem:[#allocation2 + $0x4] sm:$0xf] }
 0x239   : > { %2244 = vmatmul.mubr.msk.bf16.vlgmr.msra.gmra.mrb[4].mxu1 %vm720_vm2, %v1201_v16  ;;  %2250 = vmatmul.mubr.msk.bf16.vlgmr.msra.gmra.mrb[8].mxu0 %vm720_vm2, %v1202_v17  ;;  %v1203_v20 = vld [vmem:[#allocation2 + $0x8] sm:$0xf]  ;;  %v1204_v21 = vld [vmem:[#allocation2 + $0xc] sm:$0xf] }
 0x23a   : > { %2254 = vmatpush3.bf16.xpose.msra.mxu1 %v1302_v18  ;;  %2260 = vmatpush3.bf16.xpose.msra.mxu0 %v1348_v19  ;;  %v1046_v19 = vrot.slane %v864_v57, %v3073_v32 }
 0x23b   : > { %2255 = vmatprep.mubr.msk.bf16.mxu1 %vm2691_vm0, %v2690_v0  ;;  %2261 = vmatprep.mubr.msk.bf16.mxu0 %vm2691_vm0, %v2690_v0 }
 0x23c   : > { %2265 = vmatprep.subr.bf16.mxu1 %v2690_v0  ;;  %2271 = vmatprep.subr.bf16.mxu0 %v2690_v0 }
 0x241   : > { %2256 = vmatmul.mubr.msk.bf16.vlgmr.msra.gmra.mrb[8].mxu1 %vm720_vm2, %v1203_v20  ;;  %2262 = vmatmul.mubr.msk.bf16.vlgmr.msra.gmra.mrb[12].mxu0 %vm720_vm2, %v1204_v21 }
 0x242   : > { %2267 = vmatprep.mubr.msk.bf16.mxu1 %vm2691_vm0, %v2690_v0  ;;  %2273 = vmatprep.mubr.msk.bf16.mxu0 %vm2691_vm0, %v2690_v0 }
 0x30c   : > { %v1246_v29 = vpop.f32.mrb[4].mxu1  ;;  %v1292_v31 = vpop.f32.mrb[8].mxu0 }
 0x30d   : > { %v3152_v33 = vsel %vm1398_vm5, %v1246_v29, -1e+30  ;;  %v3156_v34 = vsel %vm1398_vm5, %v1292_v31, -1e+30  ;;  %v2245_v35 = vpop.f32.mrb[5].mxu1  ;;  %v2251_v37 = vpop.f32.mrb[9].mxu0 }
 0x30e   : > { %v1249_v38 = vpop.f32.mrb[6].mxu1  ;;  %v1295_v39 = vpop.f32.mrb[10].mxu0  ;;  %v1409_v40 = vsel %vm720_vm2, %v3152_v33, -inf  ;;  %v1412_v26 = vsel %vm720_vm2, %v3156_v34, -inf }
 0x30f   : > { %1410 = vmax.xlane.f32.xlu0 %v1409_v40  ;;  %v2246_v41 = vpop.f32.mrb[7].mxu1  ;;  %1413 = vmax.xlane.f32.xlu1 %v1412_v26  ;;  %v2252_v42 = vpop.f32.mrb[11].mxu0 }
 0x314   : > { %v1338_v43 = vpop.f32.mrb[8].mxu1  ;;  %v1384_v44 = vpop.f32.mrb[12].mxu0 }
 0x315   : > { %v3164_v45 = vsel %vm1398_vm5, %v1338_v43, -1e+30  ;;  %v2257_v46 = vpop.f32.mrb[9].mxu1  ;;  %v2263_v47 = vpop.f32.mrb[13].mxu0  ;;  %v3173_v52 = vsel %vm1398_vm5, %v1384_v44, -1e+30 }
 0x316   : > { %v1341_v48 = vpop.f32.mrb[10].mxu1  ;;  %v1387_v49 = vpop.f32.mrb[14].mxu0  ;;  %v1415_v50 = vsel %vm720_vm2, %v3164_v45, -inf  ;;  %v1418_v56 = vsel %vm720_vm2, %v3173_v52, -inf }
 0x317   : > { %1416 = vmax.xlane.f32.xlu0 %v1415_v50  ;;  %v2258_v53 = vpop.f32.mrb[11].mxu1  ;;  %v2264_v54 = vpop.f32.mrb[15].mxu0 }
 0x31b   : > { %1419 = vmax.xlane.f32.xlu0 %v1418_v56 }
 0x320   : > { %1034 = vrot.lane.b32.xlu1 %v864_v57, %s2694_s2  ;;  %s2186_s2 = sshll.u32 %s3415_s23, 7 }
 0x324   : > { %1038 = vrot.lane.b32.xlu1 %v864_v57, %s2693_s10  ;;  %s3416_s10 = sld [smem:[#allocation28_spill]] }
 0x331   : > { %1036 = vrot.lane.b32.xlu0 %v864_v57, %s2695_s11  ;;  %s481_s11 = scalar_lea.vmem [#allocation15], %s2156_s21 }
 0x332   : > { %s2004_s4 = sshll.u32 %s481_s11, 4  ;;  %s3320_s4 = int_to_ptr.vmem [resolvable:$true] %s2004_s4 }
 0x333   : > { %s2587_s28 = scalar_lea.vmem %s3320_s4, 128 }
 0x334   : > { %p2588_p0 = scmp.ne.s32.totalorder %s3320_s4, %s2587_s28 }
 0x336   : > { %p2589_p4 = pnand %p2588_p0, %p3418_p2 }
 0x338   : > { %p2590_p8 = pneg %p2589_p4 }
 0x39c   : > { %v1411_v59 = vpop.xlane.xlu0 %1410  ;;  %v1414_v60 = vpop.xlane.xlu1 %1413 }
 0x39d   : > { %v3185_v61 = vmax.f32 %v3180_v58, %v1411_v59  ;;  %v3188_v62 = vmax.f32 %v3182_v30, %v1414_v60 }
 0x39f   : > { %v1425_v63 = vsub.f32 %v3180_v58, %v3185_v61  ;;  %1723 = vst.msk [vmem:[#allocation3] sm:$0xff] %vm711_vm4, %v3185_v61  ;;  %v1426_v1 = vsub.f32 %v3182_v30, %v3188_v62  ;;  %1724 = vst.msk [vmem:[#allocation3 + $0x8] sm:$0xff] %vm711_vm4, %v3188_v62  ;;  %1439 = vperm.xlu1 %2409, %v3185_v61   ;;  %1444 = vperm.xlu0 %2410, %v3188_v62   ;;  %v1471_v30 = vld [vmem:[#allocation4 + $0x10] sm:$0xff] }
 0x3a0   : > { %v1035_v2 = vpop.permute.xlu1 %1034 }
 0x3a1   : > { %v1080_v9 = vrot.slane %v1035_v2, %v3073_v32 }
 0x3a4   : > { %v1417_v4 = vpop.xlane.xlu0 %1416  ;;  %v1039_v5 = vpop.permute.xlu1 %1038 }
 0x3a5   : > { %v3203_v6 = vmax.f32 %v3200_v3, %v1417_v4  ;;  %v1088_v8 = vrot.slane %v1039_v5, %v3073_v32 }
 0x3a7   : > { %v1427_v11 = vsub.f32 %v3200_v3, %v3203_v6  ;;  %1725 = vst.msk [vmem:[#allocation3 + $0x10] sm:$0xff] %vm711_vm4, %v3203_v6  ;;  %1449 = vperm.xlu1 %2409, %v3203_v6   ;;  %v1089_v12 = vcombine.low %v1080_v9, %v1088_v8  ;;  %v1090_v15 = vcombine.high %v1080_v9, %v1088_v8  ;;  %v1431_v6 = vmul.f32 1.442695, %v1426_v1 }
 0x3a8   : > { %v1420_v13 = vpop.xlane.xlu0 %1419 }
 0x3a9   : > { %v3215_v14 = vmax.f32 %v3207_v10, %v1420_v13  ;;  %v1097_v16 = vrot.slane %v1089_v12, %v3077_v36  ;;  %v1104_v21 = vrot.slane %v1090_v15, %v3077_v36 }
 0x3ab   : > { %1726 = vst.msk [vmem:[#allocation3 + $0x18] sm:$0xff] %vm711_vm4, %v3215_v14  ;;  %1454 = vperm.xlu1 %2409, %v3215_v14   ;;  %v1428_v17 = vsub.f32 %v3207_v10, %v3215_v14  ;;  %v1105_v24 = vcombine.high %v1097_v16, %v2692_v7  ;;  %v1106_v28 = vcombine.high %v1104_v21, %v2692_v7  ;;  %v1112_v29 = vshrl.u32 %v1097_v16, 16  ;;  %v1469_v14 = vld [vmem:[#allocation4] sm:$0xff] }
 0x3ac   : > { %v1037_v18 = vpop.permute.xlu0 %1036  ;;  %v1128_v40 = vshrl.u32 %v1104_v21, 16 }
 0x3ad   : > { %v1054_v20 = vrot.slane %v1037_v18, %v3073_v32  ;;  %v1120_v39 = vshrl.u32 %v1105_v24, 16  ;;  %v1136_v47 = vshrl.u32 %v1106_v28, 16  ;;  %v1435_v61 = vmul.f32 1.442695, %v1428_v17  ;;  %v1470_v17 = vld [vmem:[#allocation4 + $0x8] sm:$0xff] }
 0x3af   : > { %v1055_v22 = vcombine.low %v1046_v19, %v1054_v20  ;;  %v1056_v23 = vcombine.high %v1046_v19, %v1054_v20 }
 0x3b1   : > { %v1063_v25 = vrot.slane %v1055_v22, %v3077_v36  ;;  %v1070_v27 = vrot.slane %v1056_v23, %v3077_v36 }
 0x3b3   : > { %v1071_v31 = vcombine.high %v1063_v25, %v2692_v7  ;;  %v1072_v35 = vcombine.high %v1070_v27, %v2692_v7  ;;  %v1109_v37 = vpack.i.b16 %v1097_v16, %v1063_v25  ;;  %v1111_v38 = vshrl.u32 %v1063_v25, 16 }
 0x3b4   : > { %v1125_v26 = vpack.i.b16 %v1104_v21, %v1070_v27  ;;  %v1127_v41 = vshrl.u32 %v1070_v27, 16 }
 0x3b5   : > { %v1113_v42 = vpack.i.b16 %v1112_v29, %v1111_v38  ;;  %v1117_v43 = vpack.i.b16 %v1105_v24, %v1071_v31  ;;  %v1119_v44 = vshrl.u32 %v1071_v31, 16  ;;  %v1133_v46 = vpack.i.b16 %v1106_v28, %v1072_v35 }
 0x3b6   : > { %v1129_v48 = vpack.i.b16 %v1128_v40, %v1127_v41  ;;  %v1135_v49 = vshrl.u32 %v1072_v35, 16  ;;  %v1139_v50 = vcombine.low %v1109_v37, %v1125_v26 }
 0x3b7   : > { %v1121_v51 = vpack.i.b16 %v1120_v39, %v1119_v44  ;;  %v1147_v53 = vcombine.low %v1117_v43, %v1133_v46 }
 0x3b8   : > { %v1137_v54 = vpack.i.b16 %v1136_v47, %v1135_v49  ;;  %v1164_v55 = vcombine.low %v1113_v42, %v1129_v48  ;;  %v1146_v56 = vrot.slane %v1139_v50, %v3073_v32  ;;  %v1433_v49 = vmul.f32 1.442695, %v1427_v11 }
 0x3b9   : > { %v1154_v57 = vrot.slane %v1147_v53, %v3073_v32 }
 0x3ba   : > { %v1172_v59 = vcombine.low %v1121_v51, %v1137_v54  ;;  %v1171_v2 = vrot.slane %v1164_v55, %v3073_v32 }
 0x3bb   : > { %v1155_v60 = vcombine.low %v1146_v56, %v1154_v57 }
 0x3bc   : > { %v1179_v4 = vrot.slane %v1172_v59, %v3073_v32 }
 0x3bd   : > { %v1162_v5 = vrot.slane %v1155_v60, %v3077_v36 }
 0x3be   : > { %v1180_v8 = vcombine.low %v1171_v2, %v1179_v4  ;;  %v1472_v4 = vld [vmem:[#allocation4 + $0x18] sm:$0xff] }
 0x3bf   : > { %v1163_v9 = vcombine.high %v1162_v5, %v2692_v7  ;;  %v1192_v15 = vshrl.u32 %v1162_v5, 16 }
 0x3c0   : > { %v1187_v12 = vrot.slane %v1180_v8, %v3077_v36 }
 0x3c1   : > { %v1198_v19 = vshrl.u32 %v1163_v9, 16 }
 0x3c2   : > { %v1191_v13 = vpack.i.b16 %v1187_v12, %v1162_v5  ;;  %v1193_v16 = vshrl.u32 %v1187_v12, 16  ;;  %v1188_v18 = vcombine.high %v1187_v12, %v2692_v7 }
 0x3c4   : > { %v1507_v20 = vsel %vm1505_vm6, %v1191_v13, 0  ;;  %v1194_v21 = vpack.i.b16 %v1193_v16, %v1192_v15  ;;  %v1197_v22 = vpack.i.b16 %v1188_v18, %v1163_v9  ;;  %v1199_v23 = vshrl.u32 %v1188_v18, 16 }
 0x3c5   : > { %2266 = vmatpush3.bf16.msra.mxu1 %v1507_v20 }
 0x3c6   : > { %v1553_v24 = vsel %vm1505_vm6, %v1194_v21, 0  ;;  %2277 = vmatprep.subr.bf16.mxu1 %v2690_v0  ;;  %v1599_v25 = vsel %vm1505_vm6, %v1197_v22, 0  ;;  %v1200_v27 = vpack.i.b16 %v1199_v23, %v1198_v19  ;;  %v2417_v19 = vld [vmem:[%s3413_s16] sm:$0xff]   ;;  %v1688_v22 = vld [vmem:[#allocation5 + $0x8] sm:$0xff]  ;;  %s3318_s16 = scalar_lea.hbm %s3417_s22, %s2186_s2 }
 0x3c7   : > { %2272 = vmatpush3.bf16.msra.mxu0 %v1553_v24  ;;  %v1687_v21 = vld [vmem:[#allocation5] sm:$0xff] }
 0x3c8   : > { %2283 = vmatprep.subr.bf16.mxu0 %v2690_v0  ;;  %v1645_v28 = vsel %vm1505_vm6, %v1200_v27, 0 }
 0x41e   : > { %v1440_v7 = vpop.permute.xlu1 %1439  ;;  %v1445_v29 = vpop.permute.xlu0 %1444 }
 0x41f   : > { %v1457_v31 = vsub.f32 %v3152_v33, %v1440_v7  ;;  %v1458_v35 = vsub.f32 %v3156_v34, %v1445_v29 }
 0x421   : > { %v1461_v37 = vmul.f32 1.442695, %v1457_v31  ;;  %v1463_v38 = vmul.f32 1.442695, %v1458_v35 }
 0x423   : > { %2419 = vpow2.f32 %v1461_v37 }
 0x424   : > { %2421 = vpow2.f32 %v1463_v38 }
 0x426   : > { %v1450_v39 = vpop.permute.xlu1 %1449 }
 0x427   : > { %v1459_v40 = vsub.f32 %v3164_v45, %v1450_v39  ;;  %v1429_v45 = vmul.f32 1.442695, %v1425_v63 }
 0x429   : > { %v1465_v26 = vmul.f32 1.442695, %v1459_v40 }
 0x42a   : > { %v1455_v41 = vpop.permute.xlu1 %1454 }
 0x42b   : > { %2423 = vpow2.f32 %v1465_v26  ;;  %v1460_v42 = vsub.f32 %v3173_v52, %v1455_v41  ;;  %v1689_v26 = vld [vmem:[#allocation5 + $0x10] sm:$0xff] }
 0x42d   : > { %v2420_v43 = vpop.eup %2419  ;;  %v1467_v44 = vmul.f32 1.442695, %v1460_v42  ;;  %v1690_v42 = vld [vmem:[#allocation5 + $0x18] sm:$0xff] }
 0x42e   : > { %v2422_v46 = vpop.eup %2421  ;;  %v1477_v47 = vsel %vm720_vm2, %v2420_v43, 0.0  ;;  %v1498_v33 = vpack.c.bf16 %v2420_v43, %v2420_v43 }
 0x42f   : > { %2425 = vpow2.f32 %v1467_v44  ;;  %1478 = vadd.xlane.f32.xlu0 %v1477_v47  ;;  %v1480_v34 = vsel %vm720_vm2, %v2422_v46, 0.0  ;;  %v1499_v48 = vpack.c.bf16 %v2422_v46, %v2422_v46 }
 0x430   : > { %1481 = vadd.xlane.f32.xlu1 %v1480_v34  ;;  %2268 = vmatmul.mubr.msk.bf16.vlgmr.msra.gmra.mrb[12].mxu1 %vm720_vm2, %v1498_v33  ;;  %2427 = vpow2.f32 %v1429_v45 }
 0x431   : > { %2274 = vmatmul.mubr.msk.bf16.vlgmr.msra.gmra.mrb[16].mxu0 %vm720_vm2, %v1499_v48  ;;  %2278 = vmatpush3.bf16.msra.mxu1 %v1599_v25  ;;  %2429 = vpow2.f32 %v1433_v49 }
 0x432   : > { %2284 = vmatpush3.bf16.msra.mxu0 %v1645_v28  ;;  %2279 = vmatprep.mubr.msk.bf16.mxu1 %vm2691_vm0, %v2690_v0  ;;  %2431 = vpow2.f32 %v1435_v61 }
 0x433   : > { %2285 = vmatprep.mubr.msk.bf16.mxu0 %vm2691_vm0, %v2690_v0  ;;  %2289 = vmatprep.subr.bf16.mxu1 %v2690_v0  ;;  %2433 = vpow2.f32 %v1431_v6 }
 0x435   : > { %v2424_v52 = vpop.eup %2423 }
 0x436   : > { %v1483_v50 = vsel %vm720_vm2, %v2424_v52, 0.0  ;;  %v1500_v51 = vpack.c.bf16 %v2424_v52, %v2424_v52 }
 0x437   : > { %1484 = vadd.xlane.f32.xlu0 %v1483_v50 }
 0x438   : > { %2280 = vmatmul.mubr.msk.bf16.vlgmr.msra.gmra.mrb[16].mxu1 %vm720_vm2, %v1500_v51 }
 0x439   : > { %v2426_v58 = vpop.eup %2425  ;;  %2293 = vmatprep.mubr.msk.bf16.mxu1 %vm2691_vm0, %v2690_v0  ;;  %2290 = vmatpush3.bf16.msra.mxu1 %v2417_v19 }
 0x43a   : > { %v1486_v63 = vsel %vm720_vm2, %v2426_v58, 0.0  ;;  %v1501_v53 = vpack.c.bf16 %v2426_v58, %v2426_v58  ;;  %v2428_v3 = vpop.eup %2427  ;;  %2291 = vmatprep.subr.bf16.mxu1 %v2690_v0 }
 0x43b   : > { %1487 = vadd.xlane.f32.xlu0 %v1486_v63  ;;  %v2430_v11 = vpop.eup %2429  ;;  %v1473_v55 = vmul.f32 %v2428_v3, %v1469_v14 }
 0x43c   : > { %2286 = vmatmul.mubr.msk.bf16.vlgmr.msra.gmra.mrb[20].mxu0 %vm720_vm2, %v1501_v53  ;;  %v2432_v54 = vpop.eup %2431  ;;  %v1475_v62 = vmul.f32 %v2430_v11, %v1471_v30 }
 0x43d   : > { %v2434_v10 = vpop.eup %2433  ;;  %v1476_v12 = vmul.f32 %v2432_v54, %v1472_v4 }
 0x43e   : > { %v1474_v56 = vmul.f32 %v2434_v10, %v1470_v17 }
 0x441   : > { %1693 = vperm.xlu1 %2409, %v2428_v3  }
 0x445   : > { %1703 = vperm.xlu1 %2409, %v2430_v11  }
 0x449   : > { %1708 = vperm.xlu1 %2409, %v2432_v54  }
 0x451   : > { %1698 = vperm.xlu0 %2410, %v2434_v10  }
 0x4bc   : > { %v1479_v57 = vpop.xlane.xlu0 %1478 }
 0x4bd   : > { %v1482_v59 = vpop.xlane.xlu1 %1481  ;;  %v1489_v60 = vadd.f32 %v1479_v57, %v1473_v55 }
 0x4be   : > { %v1490_v2 = vadd.f32 %v1482_v59, %v1474_v56 }
 0x4bf   : > { %1494 = vst.msk [vmem:[#allocation4] sm:$0xff] %vm711_vm4, %v1489_v60 }
 0x4c0   : > { %1495 = vst.msk [vmem:[#allocation4 + $0x8] sm:$0xff] %vm711_vm4, %v1490_v2 }
 0x4c1   : > { %v1694_v20 = vpop.permute.xlu1 %1693 }
 0x4c2   : > { %v1711_v24 = vmul.f32 %v1694_v20, %v1687_v21 }
 0x4c4   : > { %v1485_v1 = vpop.xlane.xlu0 %1484 }
 0x4c5   : > { %v1491_v5 = vadd.f32 %v1485_v1, %v1475_v62  ;;  %v1704_v25 = vpop.permute.xlu1 %1703 }
 0x4c6   : > { %v1734_v8 = vld [vmem:[#allocation4] sm:$0xff]  ;;  %v1713_v41 = vmul.f32 %v1704_v25, %v1689_v26 }
 0x4c7   : > { %1496 = vst.msk [vmem:[#allocation4 + $0x10] sm:$0xff] %vm711_vm4, %v1491_v5  ;;  %v1735_v9 = vld [vmem:[#allocation4 + $0x8] sm:$0xff]  ;;  %1740 = vperm.xlu0 %2410, %v1734_v8  }
 0x4c8   : > { %1745 = vperm.xlu1 %2409, %v1735_v9   ;;  %v1488_v13 = vpop.xlane.xlu0 %1487 }
 0x4c9   : > { %v1492_v15 = vadd.f32 %v1488_v13, %v1476_v12  ;;  %v1709_v43 = vpop.permute.xlu1 %1708 }
 0x4ca   : > { %v1714_v34 = vmul.f32 %v1709_v43, %v1690_v42 }
 0x4cb   : > { %1497 = vst.msk [vmem:[#allocation4 + $0x18] sm:$0xff] %vm711_vm4, %v1492_v15 }
 0x4ce   : > { %v1736_v16 = vld [vmem:[#allocation4 + $0x10] sm:$0xff] }
 0x4cf   : > { %1750 = vperm.xlu0 %2410, %v1736_v16  }
 0x4d0   : > { %v1699_v23 = vpop.permute.xlu0 %1698 }
 0x4d1   : > { %v1712_v27 = vmul.f32 %v1699_v23, %v1688_v22 }
 0x4d2   : > { %v1737_v18 = vld [vmem:[#allocation4 + $0x18] sm:$0xff] }
 0x4d3   : > { %1755 = vperm.xlu1 %2409, %v1737_v18   ;;  %v2418_v18 = vld [vmem:[%s3414_s3 + $0x8] sm:$0xff]  }
 0x4d4   : > { %2292 = vmatpush3.bf16.msra.mxu1 %v2418_v18 }
 0x503   : > { %v1543_v28 = vpop.f32.mrb[12].mxu1 }
 0x504   : > { %v1715_v7 = vadd.f32 %v1711_v24, %v1543_v28  ;;  %v1589_v29 = vpop.f32.mrb[16].mxu0  ;;  %v2269_v31 = vpop.f32.mrb[13].mxu1 }
 0x505   : > { %v1716_v35 = vadd.f32 %v1712_v27, %v1589_v29  ;;  %v2275_v37 = vpop.f32.mrb[17].mxu0  ;;  %v1546_v38 = vpop.f32.mrb[14].mxu1 }
 0x506   : > { %1719 = vst.msk [vmem:[#allocation5] sm:$0xff] %vm720_vm2, %v1715_v7  ;;  %v1592_v39 = vpop.f32.mrb[18].mxu0  ;;  %v2270_v40 = vpop.f32.mrb[15].mxu1 }
 0x507   : > { %1720 = vst.msk [vmem:[#allocation5 + $0x8] sm:$0xff] %vm720_vm2, %v1716_v35  ;;  %v2276_v0 = vpop.f32.mrb[19].mxu0 }
 0x50b   : > { %v1635_v44 = vpop.f32.mrb[16].mxu1 }
 0x50c   : > { %v1717_v46 = vadd.f32 %v1713_v41, %v1635_v44  ;;  %v2281_v47 = vpop.f32.mrb[17].mxu1 }
 0x50d   : > { %v1638_v33 = vpop.f32.mrb[18].mxu1  ;;  %v1730_v14 = vld [vmem:[#allocation5] sm:$0xff] }
 0x50e   : > { %1721 = vst.msk [vmem:[#allocation5 + $0x10] sm:$0xff] %vm720_vm2, %v1717_v46  ;;  %v2282_v48 = vpop.f32.mrb[19].mxu1  ;;  %v1731_v56 = vld [vmem:[#allocation5 + $0x8] sm:$0xff] }
 0x50f   : > { %v1681_v45 = vpop.f32.mrb[20].mxu0 }
 0x510   : > { %v1718_v52 = vadd.f32 %v1714_v34, %v1681_v45  ;;  %v2287_v49 = vpop.f32.mrb[21].mxu0 }
 0x511   : > { %v1684_v50 = vpop.f32.mrb[22].mxu0 }
 0x512   : > { %1722 = vst.msk [vmem:[#allocation5 + $0x18] sm:$0xff] %vm720_vm2, %v1718_v52  ;;  %v2288_v51 = vpop.f32.mrb[23].mxu0  ;;  %v2181_v52 = vld [vmem:[%s3416_s10] ss:$0 sm:$0xff] }
 0x515   : > { %v1732_v11 = vld [vmem:[#allocation5 + $0x10] sm:$0xff] }
 0x519   : > { %v1733_v57 = vld [vmem:[#allocation5 + $0x18] sm:$0xff] }
 0x546   : > { %v1741_v58 = vpop.permute.xlu0 %1740 }
 0x547   : > { %v1746_v61 = vpop.permute.xlu1 %1745  ;;  %2435 = vrcp.f32 %v1741_v58 }
 0x54e   : > { %v1751_v63 = vpop.permute.xlu0 %1750 }
 0x54f   : > { %2437 = vrcp.f32 %v1751_v63 }
 0x550   : > { %2439 = vrcp.f32 %v1746_v61 }
 0x551   : > { %v2436_v3 = vpop.eup %2435 }
 0x552   : > { %v1756_v53 = vpop.permute.xlu1 %1755  ;;  %v1759_v17 = vmul.f32 %v2436_v3, %v1730_v14 }
 0x553   : > { %2441 = vrcp.f32 %v1756_v53 }
 0x559   : > { %v2438_v6 = vpop.eup %2437 }
 0x55a   : > { %v1763_v54 = vmul.f32 %v2438_v6, %v1732_v11  ;;  %v2440_v10 = vpop.eup %2439 }
 0x55b   : > { %v1761_v59 = vmul.f32 %v2440_v10, %v1731_v56 }
 0x55c   : > { %v1766_v60 = vcombine.low %v1759_v17, %v1763_v54  ;;  %v1767_v2 = vcombine.high %v1759_v17, %v1763_v54 }
 0x55d   : > { %v2442_v55 = vpop.eup %2441 }
 0x55e   : > { %v1765_v30 = vmul.f32 %v2442_v55, %v1733_v57  ;;  %v1774_v4 = vrot.slane %v1766_v60, %v3073_v32  ;;  %v1781_v5 = vrot.slane %v1767_v2, %v3073_v32 }
 0x560   : > { %v1782_v62 = vcombine.low %v1761_v59, %v1765_v30  ;;  %v1783_v1 = vcombine.high %v1761_v59, %v1765_v30 }
 0x562   : > { %v1790_v8 = vrot.slane %v1782_v62, %v3073_v32  ;;  %v1797_v9 = vrot.slane %v1783_v1, %v3073_v32 }
 0x564   : > { %v1798_v12 = vcombine.low %v1774_v4, %v1790_v8  ;;  %v1799_v13 = vcombine.high %v1774_v4, %v1790_v8  ;;  %v1814_v15 = vcombine.low %v1781_v5, %v1797_v9  ;;  %v1815_v16 = vcombine.high %v1781_v5, %v1797_v9 }
 0x566   : > { %v1806_v19 = vrot.slane %v1798_v12, %v3077_v36  ;;  %v1813_v20 = vrot.slane %v1799_v13, %v3077_v36  ;;  %v1822_v21 = vrot.slane %v1814_v15, %v3077_v36  ;;  %v1829_v22 = vrot.slane %v1815_v16, %v3077_v36 }
 0x568   : > { %v1834_v23 = vcombine.low %v1806_v19, %v1813_v20  ;;  %v2179_v24 = vcombine.high %v1806_v19, %v1813_v20  ;;  %v1850_v25 = vcombine.low %v1822_v21, %v1829_v22  ;;  %v2180_v27 = vcombine.high %v1822_v21, %v1829_v22 }
 0x56a   : > { %v1841_v28 = vrot.slane %v1834_v23, %v3073_v32  ;;  %v1849_v7 = vrot.slane %v2179_v24, %v3073_v32  ;;  %v1857_v29 = vrot.slane %v1850_v25, %v3073_v32  ;;  %v1865_v31 = vrot.slane %v2180_v27, %v3073_v32 }
 0x56c   : > { %v1867_v35 = vcombine.high %v1841_v28, %v1849_v7  ;;  %v1883_v37 = vcombine.high %v1857_v29, %v1865_v31  ;;  %v1866_v38 = vcombine.low %v1841_v28, %v1849_v7  ;;  %v1882_v39 = vcombine.low %v1857_v29, %v1865_v31 }
 0x56e   : > { %v1881_v40 = vrot.slane %v1867_v35, %v3077_v36  ;;  %v1897_v26 = vrot.slane %v1883_v37, %v3077_v36  ;;  %v1874_v0 = vrot.slane %v1866_v38, %v3077_v36  ;;  %v1890_v41 = vrot.slane %v1882_v39, %v3077_v36 }
 0x570   : > { %v1900_v42 = vcombine.low %v1881_v40, %v1897_v26  ;;  %v1899_v43 = vcombine.high %v1874_v0, %v1890_v41  ;;  %v1898_v44 = vcombine.low %v1874_v0, %v1890_v41  ;;  %v1901_v32 = vcombine.high %v1881_v40, %v1897_v26 }
 0x572   : > { %1907 = vrot.lane.b32.xlu1 %v1900_v42, %s2699_s25  ;;  %1903 = vrot.lane.b32.xlu0 %v1899_v43, %s2700_s13  ;;  %s2702_s25 = smov [#allocation15]  }
 0x573   : > { %s2591_s13 = sshll.u32 %s2702_s25, 4  ;;  %s2592_s13 = int_to_ptr.vmem [resolvable:$false] %s2591_s13 }
 0x574   : > { %s2593_s23 = scalar_lea.vmem %s2592_s13, 256  ;;  %p2594_p1 = scmp.lt.s32.totalorder %s3320_s4, %s2592_s13 }
 0x575   : > { %p2595_p13 = scmp.lt.s32.totalorder %s2593_s23, %s2587_s28 }
 0x576   : > { %1911 = vrot.lane.b32.xlu0 %v1901_v32, %s2701_s19 }
 0x577   : > { %p2596_p3 = por %p2595_p13, %p2594_p1 }
 0x579   : > { %p2597_p5 = pnand %p2596_p3, %p2590_p8 }
 0x5e4   : > { %v1904_v46 = vpop.permute.xlu0 %1903  ;;  %v1908_v47 = vpop.permute.xlu1 %1907 }
 0x5e5   : > { %v1915_v33 = vsel %vm720_vm2, %v1898_v44, %v1904_v46 }
 0x5e6   : > { %v1917_v36 = vsel %vm1916_vm7, %v1915_v33, %v1908_v47 }
 0x5e8   : > { %v1912_v34 = vpop.permute.xlu0 %1911 }
 0x5e9   : > { %v1919_v48 = vsel %vm1918_vm8, %v1917_v36, %v1912_v34 }
 0x5ea   : > { %v1920_v45 = vpack.c.bf16 %v1919_v48, %v1919_v48 }
 0x5ec   : > { %2294 = vmatmul.mubr.msk.bf16.vlgmr.msra.gmra.mrb[20].mxu1 %vm511_vm1, %v1920_v45 }
 0x6bf   : > { %v1982_v49 = vpop.f32.mrb[20].mxu1 }
 0x6c0   : > { %v1983_v50 = vadd.f32 %v2181_v52, %v1982_v49  ;;  %v2295_v51 = vpop.f32.mrb[21].mxu1 }
 0x6c1   : > { %v1985_v58 = vpop.f32.mrb[22].mxu1 }
 0x6c2   : > { %v2296_v61 = vpop.f32.mrb[23].mxu1  ;;  %1988 = vst.msk [vmem:[%s481_s11] sm:$0xff] %vm511_vm1, %v1983_v50 }
 0x6c3   : > { %2600 = shalt.err (!%p2597_p5)
}
 0x6c4   : > { %s2601_s20 = scalar_lea.hbm %s3318_s16, 128  ;;  %s2605_s8 = scalar_lea.hbm %s3417_s22, 256 }
 0x6c5   : > { %p2602_p6 = scmp.ne.s32.totalorder %s3318_s16, %s2601_s20  ;;  %p2606_p7 = scmp.lt.u32.totalorder %s3318_s16, %s3417_s22 }
 0x6c6   : > { %p2607_p11 = scmp.lt.u32.totalorder %s2605_s8, %s2601_s20  ;;  %p2609_p0 = scmp.lt.u32.totalorder %s2601_s20, %s3318_s16 }
 0x6c7   : > { %p2603_p12 = pnand %p2602_p6, %p3418_p2 }
 0x6c8   : > { %p2608_p9 = por %p2607_p11, %p2606_p7 }
 0x6c9   : > { %p2604_p10 = pneg %p2603_p12 }
 0x6ca   : > { %p2610_p4 = por %p2609_p0, %p2608_p9 }
 0x6cc   : > { %p2611_p8 = pnand %p2610_p4, %p2604_p10 }
 0x6ce   : > { %2614 = shalt.err (!%p2611_p8)
}
 0x6cf   : > { %2313 = dma.vmem_to_hbm [thread:$0]  (%p3418_p2), %s3320_s4, 128, %s3318_s16, %s1990_s29  }
 0x6d0 PF: > { %s3419_s2 = sld [smem:[#allocation21_spill]]  ;;  %s3420_s11 = sld [smem:[#allocation23_spill]] }
 0x6d1   : > { %p3422_p13 = scmp.ge.s32.totalorder %s2681_s18, 2 }
 0x6d6   : > { %s2016_s30 = sand.u32 1, %s3419_s2   ;;  %p3421_p1 = scmp.ne.s32.totalorder %s3420_s11, 0 }
 0x6d7   : > { %s2017_s27 = scalar_lea.sflag [#allocation8], %s2016_s30 }
 0x6d8   : > { %p2333_p3 = pnand %p3422_p13, %p3421_p1 }
 0x6da   : > { %2656 = dma.done.wait (!%p2333_p3), %s2017_s27, 128  }
 0x6db   : > { %2658 = vsyncadd (!%p2333_p3), %s2017_s27, 4294967168  ;;  %s30_s18 = sadd.s32 1, %s2681_s18   ;;  %s3423_s13 = smov %s2665_s14 }
 0x6dc   : > { %p27_p5 = scmp.ge.s32.totalorder %s30_s18, 4   ;;  %s3424_s14 = smov %s2669_s15 }
 0x6dd   : > { %s3425_s15 = smov %s2928_s12  ;;  %s3426_s16 = smov %s2677_s17 }
 0x6de   : > { %s3427_s17 = smov %s3429_s26  ;;  %29 = sbr.rel (!%p27_p5) target bundleno = 16 (0x10), region = 142 }
 0x6e5   :  { %2022 = vsyncpa [#allocation7], 1 }
 0x6e6   :  { %2024 = vsyncpa [#allocation7 + $0x1], 1 }
 0x6e7   :  { %2025 = vsyncpa [#allocation10], 1 }
 0x6e8   :  { %2027 = vsyncpa [#allocation10 + $0x1], 1 }
 0x6e9   :  { %2028 = vsyncpa [#allocation13], 1 }
 0x6ea   :  { %2029 = vsyncpa [#allocation8], 1 }
 0x6eb   :  { %2031 = vsyncpa [#allocation8 + $0x1], 1 }

</bundles_post_ra>
